<compile_context>
chip_gen: v6e
topology: v6e:2x2x1
jax: 0.10.0
libtpu: 0.0.40
codegen_flags: <defaults>
</compile_context>

<pallas_src>
import jax
import jax.numpy as jnp
from jax import lax
from jax.experimental import pallas as pl
from jax.experimental.pallas import tpu as pltpu


def rnn_time_kernel(x_ref,       # (L*B, 1)        input, time-major, flattened
                    wpre_ref,    # (1, H)          linear_pre weight (in_dim == 1)
                    bpre_ref,    # (1, H)          linear_pre bias
                    wih_ref,     # (NL, H, 4H)     W_ih^T per layer (i,f,g,o), 0.5-folded
                    whh_ref,     # (NL, H, 4H)     W_hh^T per layer, 0.5-folded
                    bias_ref,    # (NL, 1, 4H)     b_ih + b_hh per layer, 0.5-folded
                    w12_ref,     # (L, H, out_dim) folded last1*last2 weight per step
                    beff_ref,    # (1, out_dim)    folded last1/last2 bias
                    actso_ref,   # (2, 4H)         row0: post-tanh scale, row1: offset
                    out_ref):    # (B, out_dim)    output
    LB = x_ref.shape[0]
    H = wpre_ref.shape[1]
    G = 4 * H
    B, out_dim = out_ref.shape
    L = LB // B
    NL = wih_ref.shape[0]

    # ---- linear_pre (in_dim == 1) + ReLU (dropout is identity in eval) ----------
    pre = jnp.maximum(x_ref[...] * wpre_ref[...] + bpre_ref[...], 0.0)   # (LB, H)

    # ---- layer-0 input-side gates hoisted: one batched MXU op for the whole seq -
    gx0 = (jnp.dot(pre, wih_ref[0], preferred_element_type=jnp.float32)
           + bias_ref[0])                                                # (LB, 4H)

    # Loop-invariant activation scale/offset (broadcasts hoisted out of the unroll):
    #   i/f/o lanes: act = 0.5*tanh(0.5*z) + 0.5 == sigmoid(z)   (0.5 folded in weights)
    #   g lanes    : act = tanh(z)
    sc = jnp.broadcast_to(actso_ref[0:1, :], (B, G))
    off = jnp.broadcast_to(actso_ref[1:2, :], (B, G))

    # Per-layer weights loaded once into vregs.
    w_hh = [whh_ref[l] for l in range(NL)]                               # (H, 4H) each
    w_ih = [None] + [wih_ref[l] for l in range(1, NL)]
    bias_b = [None] + [jnp.broadcast_to(bias_ref[l], (B, G)) for l in range(1, NL)]

    def lstm_step(gx, h_prev, c_prev, whh_l):
        gates = gx + jnp.dot(h_prev, whh_l, preferred_element_type=jnp.float32)
        th = jnp.tanh(gates)                      # single EUP pass for all four gates
        act = th * sc + off
        i_g = act[:, 0 * H:1 * H]
        f_g = act[:, 1 * H:2 * H]
        g_g = act[:, 2 * H:3 * H]
        o_g = act[:, 3 * H:4 * H]
        c_new = f_g * c_prev + i_g * g_g
        h_new = o_g * jnp.tanh(c_new)
        return h_new, c_new

    h = [jnp.zeros((B, H), jnp.float32) for _ in range(NL)]
    c = [jnp.zeros((B, H), jnp.float32) for _ in range(NL)]
    pend = [None] * NL          # pending input-side gates for layers >= 1
    hlast = [None] * L          # last-layer hidden state per step

    # ---- wavefront over (layer, time): wave s runs layer l at step t = s - l -----
    for s in range(L + NL - 1):                   # static unroll (L, NL compile-time)
        new_pend = list(pend)
        for l in range(NL):
            t = s - l
            if t < 0 or t >= L:
                continue
            gx = gx0[t * B:(t + 1) * B, :] if l == 0 else pend[l]
            h[l], c[l] = lstm_step(gx, h[l], c[l], w_hh[l])
            if l + 1 < NL:
                # Next layer's step-t input-side gates, computed one wave early
                # (off the next layer's h->h critical path).
                new_pend[l + 1] = (jnp.dot(h[l], w_ih[l + 1],
                                           preferred_element_type=jnp.float32)
                                   + bias_b[l + 1])
            else:
                hlast[t] = h[l]
        pend = new_pend

    # ---- folded last1 + last2 epilogue, fully outside the recurrence ------------
    #   out[b,:] = sum_t (h_t . w1 + b1) * w2[:, t] + b2
    #            = sum_t h_t @ (w1^T ⊗ w2[:,t]) + bias_eff
    outs = [jnp.dot(hlast[t], w12_ref[t], preferred_element_type=jnp.float32)
            for t in range(L)]
    acc = outs[0]
    for t in range(1, L):
        acc = acc + outs[t]
    out_ref[...] = acc + beff_ref[...]


def rnn_time_forward(x, kp):
    """x: (B, L) float32. Returns (B, out_dim)."""
    B, L = x.shape
    out_dim = kp["w12"].shape[2]

    # time-major flatten (row index = t*B + b); glue transpose kept in plain JAX
    x_col = jnp.transpose(x).reshape(L * B, 1)

    vmem = pl.BlockSpec(memory_space=pltpu.MemorySpace.VMEM)
    out = pl.pallas_call(
        rnn_time_kernel,
        out_shape=jax.ShapeDtypeStruct((B, out_dim), jnp.float32),
        in_specs=[vmem] * 9,
        out_specs=vmem,
    )(x_col, kp["w_pre"], kp["b_pre"], kp["w_ih_t"], kp["w_hh_t"],
      kp["bias"], kp["w12"], kp["bias_eff"], kp["act_so"])
    return out


# ----------------------- parameter construction (deterministic) ------------------

def init_raw_params(key, in_dim, hid_dim, out_dim, l_x, num_layers):
    """Parameters in PyTorch layout."""
    assert in_dim == 1
    H = hid_dim
    scale = 0.1
    keys = jax.random.split(key, 6 + num_layers)
    raw = {
        "w_pre": scale * jax.random.normal(keys[0], (H, in_dim), jnp.float32),
        "b_pre": scale * jax.random.normal(keys[1], (H,), jnp.float32),
        "w1":    scale * jax.random.normal(keys[2], (1, H), jnp.float32),
        "b1":    scale * jax.random.normal(keys[3], (1,), jnp.float32),
        "w2":    scale * jax.random.normal(keys[4], (out_dim, l_x), jnp.float32),
        "b2":    scale * jax.random.normal(keys[5], (out_dim,), jnp.float32),
        "lstm": [],
    }
    for l in range(num_layers):
        ks = jax.random.split(keys[6 + l], 4)
        raw["lstm"].append(dict(
            w_ih=scale * jax.random.normal(ks[0], (4 * H, H), jnp.float32),
            w_hh=scale * jax.random.normal(ks[1], (4 * H, H), jnp.float32),
            b_ih=scale * jax.random.normal(ks[2], (4 * H,), jnp.float32),
            b_hh=scale * jax.random.normal(ks[3], (4 * H,), jnp.float32),
        ))
    return raw


def to_kernel_params(raw):
    H = raw["w_pre"].shape[0]
    out_dim, L = raw["w2"].shape
    G = 4 * H

    # Gate lanes: PyTorch order (i, f, g, o). Fold the 0.5 pre-activation scale of
    # sigmoid(x) = 0.5*tanh(0.5*x) + 0.5 into the i/f/o columns of the transposed
    # weights and bias; the post-tanh scale/offset becomes a loop-invariant pair.
    lane = jnp.arange(G)
    is_g = (lane >= 2 * H) & (lane < 3 * H)
    gate_pre_scale = jnp.where(is_g, 1.0, 0.5).astype(jnp.float32)       # (4H,)
    act_scale = jnp.where(is_g, 1.0, 0.5).astype(jnp.float32)
    act_off = jnp.where(is_g, 0.0, 0.5).astype(jnp.float32)
    act_so = jnp.stack([act_scale, act_off]).astype(jnp.float32)          # (2, 4H)

    w_ih_t = jnp.stack([p["w_ih"].T for p in raw["lstm"]]) * gate_pre_scale[None, None, :]
    w_hh_t = jnp.stack([p["w_hh"].T for p in raw["lstm"]]) * gate_pre_scale[None, None, :]
    bias = (jnp.stack([(p["b_ih"] + p["b_hh"]).reshape(1, G) for p in raw["lstm"]])
            * gate_pre_scale[None, None, :])                              # (NL, 1, 4H)

    w1 = raw["w1"].reshape(H)                                             # (H,)
    w2 = raw["w2"]                                                        # (out_dim, L)
    # Folded last1*last2: out[b,o] = sum_t (h_t.w1 + b1)*w2[o,t] + b2[o]
    w12 = jnp.einsum("h,ot->tho", w1, w2)                                 # (L, H, out_dim)
    bias_eff = raw["b1"][0] * jnp.sum(w2, axis=1) + raw["b2"]             # (out_dim,)

    return dict(
        w_pre=raw["w_pre"].T.reshape(1, H),
        b_pre=raw["b_pre"].reshape(1, H),
        w_ih_t=w_ih_t,                                                    # (NL, H, 4H)
        w_hh_t=w_hh_t,                                                    # (NL, H, 4H)
        bias=bias,                                                        # (NL, 1, 4H)
        w12=w12,
        bias_eff=bias_eff.reshape(1, out_dim),
        act_so=act_so,
    )


# ----------------------------- pure-JAX reference --------------------------------

def rnn_time_reference(x, raw):
    B, L = x.shape
    H = raw["w_pre"].shape[0]
    h = x[:, :, None] @ raw["w_pre"].T + raw["b_pre"]       # (B, L, H)
    h = jnp.maximum(h, 0.0)
    for p in raw["lstm"]:
        h_t = jnp.zeros((B, H), jnp.float32)
        c_t = jnp.zeros((B, H), jnp.float32)
        outs = []
        for t in range(L):
            gates = (h[:, t] @ p["w_ih"].T + p["b_ih"]
                     + h_t @ p["w_hh"].T + p["b_hh"])
            i_g = jax.nn.sigmoid(gates[:, 0 * H:1 * H])
            f_g = jax.nn.sigmoid(gates[:, 1 * H:2 * H])
            g_g = jnp.tanh(gates[:, 2 * H:3 * H])
            o_g = jax.nn.sigmoid(gates[:, 3 * H:4 * H])
            c_t = f_g * c_t + i_g * g_g
            h_t = o_g * jnp.tanh(c_t)
            outs.append(h_t)
        h = jnp.stack(outs, axis=1)                         # (B, L, H)
    o1 = (h @ raw["w1"].T)[:, :, 0] + raw["b1"][0]          # (B, L)
    return o1 @ raw["w2"].T + raw["b2"]                     # (B, out_dim)


if __name__ == "__main__":
    # batch filled to the 8 f32 sublanes, seq length l_x = 8
    B, L = 8, 8
    in_dim, hid_dim, out_dim, num_layers = 1, 32, 4, 2

    key = jax.random.PRNGKey(0)
    k_x, k_p = jax.random.split(key)
    x = jax.random.normal(k_x, (B, L), dtype=jnp.float32)

    raw = init_raw_params(k_p, in_dim, hid_dim, out_dim, L, num_layers)
    kparams = to_kernel_params(raw)

    out = rnn_time_forward(x, kparams)
    out = jax.block_until_ready(out)
    assert out.shape == (B, out_dim)

    ref = rnn_time_reference(x, raw)
    err = float(jnp.max(jnp.abs(out - ref)))
    assert err < 2e-2, f"mismatch vs reference: max abs err {err}"

    print("KERNEL_OK")
</pallas_src>

<mosaic_0001>
module attributes {stable_mosaic.version = 11 : i64} {
  func.func @rnn_time_kernel(%arg0: memref<64x1xf32, #tpu.memory_space<vmem>>, %arg1: memref<1x32xf32, #tpu.memory_space<vmem>>, %arg2: memref<1x32xf32, #tpu.memory_space<vmem>>, %arg3: memref<2x32x128xf32, #tpu.memory_space<vmem>>, %arg4: memref<2x32x128xf32, #tpu.memory_space<vmem>>, %arg5: memref<2x1x128xf32, #tpu.memory_space<vmem>>, %arg6: memref<8x32x4xf32, #tpu.memory_space<vmem>>, %arg7: memref<1x4xf32, #tpu.memory_space<vmem>>, %arg8: memref<2x128xf32, #tpu.memory_space<vmem>>, %arg9: memref<8x4xf32, #tpu.memory_space<vmem>>) attributes {dimension_semantics = [], scalar_prefetch = 0 : i64, scratch_operands = 0 : i64, tpu.core_type = #tpu.core_type<tc>} {
    %c0 = arith.constant 0 : index
    %c0_0 = arith.constant 0 : index
    %0 = vector.load %arg0[%c0, %c0_0] : memref<64x1xf32, #tpu.memory_space<vmem>>, vector<64x1xf32>
    %c0_1 = arith.constant 0 : index
    %c0_2 = arith.constant 0 : index
    %1 = vector.load %arg1[%c0_1, %c0_2] : memref<1x32xf32, #tpu.memory_space<vmem>>, vector<1x32xf32>
    %2 = vector.broadcast %0 : vector<64x1xf32> to vector<64x32xf32>
    %3 = vector.broadcast %1 : vector<1x32xf32> to vector<64x32xf32>
    %4 = arith.mulf %2, %3 : vector<64x32xf32>
    %c0_3 = arith.constant 0 : index
    %c0_4 = arith.constant 0 : index
    %5 = vector.load %arg2[%c0_3, %c0_4] : memref<1x32xf32, #tpu.memory_space<vmem>>, vector<1x32xf32>
    %6 = vector.broadcast %5 : vector<1x32xf32> to vector<64x32xf32>
    %7 = arith.addf %4, %6 : vector<64x32xf32>
    %cst = arith.constant 0.000000e+00 : f32
    %8 = vector.broadcast %cst : f32 to vector<64x32xf32>
    %9 = arith.maximumf %7, %8 : vector<64x32xf32>
    %c0_5 = arith.constant 0 : index
    %c0_6 = arith.constant 0 : index
    %c0_7 = arith.constant 0 : index
    %10 = vector.load %arg3[%c0_5, %c0_6, %c0_7] : memref<2x32x128xf32, #tpu.memory_space<vmem>>, vector<1x32x128xf32>
    %11 = vector.shape_cast %10 : vector<1x32x128xf32> to vector<32x128xf32>
    %cst_8 = arith.constant dense<0.000000e+00> : vector<64x128xf32>
    %12 = tpu.matmul %9, %11, %cst_8 {dimension_numbers = #tpu.dot_dimension_numbers<[1], [0], [0], [1], [0, 0, 1, 1], [], []>} : vector<64x32xf32>, vector<32x128xf32>, vector<64x128xf32> -> vector<64x128xf32>
    %c0_9 = arith.constant 0 : index
    %c0_10 = arith.constant 0 : index
    %c0_11 = arith.constant 0 : index
    %13 = vector.load %arg5[%c0_9, %c0_10, %c0_11] : memref<2x1x128xf32, #tpu.memory_space<vmem>>, vector<1x1x128xf32>
    %14 = vector.shape_cast %13 : vector<1x1x128xf32> to vector<1x128xf32>
    %15 = vector.broadcast %14 : vector<1x128xf32> to vector<64x128xf32>
    %16 = arith.addf %12, %15 : vector<64x128xf32>
    %c0_12 = arith.constant 0 : index
    %c0_13 = arith.constant 0 : index
    %17 = vector.load %arg8[%c0_12, %c0_13] : memref<2x128xf32, #tpu.memory_space<vmem>>, vector<1x128xf32>
    %18 = vector.shape_cast %17 : vector<1x128xf32> to vector<1x128xf32>
    %19 = vector.broadcast %18 : vector<1x128xf32> to vector<8x128xf32>
    %c1 = arith.constant 1 : index
    %c0_14 = arith.constant 0 : index
    %20 = vector.load %arg8[%c1, %c0_14] : memref<2x128xf32, #tpu.memory_space<vmem>>, vector<1x128xf32>
    %21 = vector.shape_cast %20 : vector<1x128xf32> to vector<1x128xf32>
    %22 = vector.broadcast %21 : vector<1x128xf32> to vector<8x128xf32>
    %c0_15 = arith.constant 0 : index
    %c0_16 = arith.constant 0 : index
    %c0_17 = arith.constant 0 : index
    %23 = vector.load %arg4[%c0_15, %c0_16, %c0_17] : memref<2x32x128xf32, #tpu.memory_space<vmem>>, vector<1x32x128xf32>
    %24 = vector.shape_cast %23 : vector<1x32x128xf32> to vector<32x128xf32>
    %c1_18 = arith.constant 1 : index
    %c0_19 = arith.constant 0 : index
    %c0_20 = arith.constant 0 : index
    %25 = vector.load %arg4[%c1_18, %c0_19, %c0_20] : memref<2x32x128xf32, #tpu.memory_space<vmem>>, vector<1x32x128xf32>
    %26 = vector.shape_cast %25 : vector<1x32x128xf32> to vector<32x128xf32>
    %c1_21 = arith.constant 1 : index
    %c0_22 = arith.constant 0 : index
    %c0_23 = arith.constant 0 : index
    %27 = vector.load %arg3[%c1_21, %c0_22, %c0_23] : memref<2x32x128xf32, #tpu.memory_space<vmem>>, vector<1x32x128xf32>
    %28 = vector.shape_cast %27 : vector<1x32x128xf32> to vector<32x128xf32>
    %c1_24 = arith.constant 1 : index
    %c0_25 = arith.constant 0 : index
    %c0_26 = arith.constant 0 : index
    %29 = vector.load %arg5[%c1_24, %c0_25, %c0_26] : memref<2x1x128xf32, #tpu.memory_space<vmem>>, vector<1x1x128xf32>
    %30 = vector.shape_cast %29 : vector<1x1x128xf32> to vector<1x128xf32>
    %31 = vector.shape_cast %30 : vector<1x128xf32> to vector<1x128xf32>
    %32 = vector.broadcast %31 : vector<1x128xf32> to vector<8x128xf32>
    %cst_27 = arith.constant 0.000000e+00 : f32
    %33 = vector.broadcast %cst_27 : f32 to vector<8x32xf32>
    %cst_28 = arith.constant 0.000000e+00 : f32
    %34 = vector.broadcast %cst_28 : f32 to vector<8x32xf32>
    %cst_29 = arith.constant 0.000000e+00 : f32
    %35 = vector.broadcast %cst_29 : f32 to vector<8x32xf32>
    %cst_30 = arith.constant 0.000000e+00 : f32
    %36 = vector.broadcast %cst_30 : f32 to vector<8x32xf32>
    %37 = vector.extract_strided_slice %16 {offsets = [0, 0], sizes = [8, 128], strides = [1, 1]} : vector<64x128xf32> to vector<8x128xf32>
    %cst_31 = arith.constant dense<0.000000e+00> : vector<8x128xf32>
    %38 = tpu.matmul %33, %24, %cst_31 {dimension_numbers = #tpu.dot_dimension_numbers<[1], [0], [0], [1], [0, 0, 1, 1], [], []>} : vector<8x32xf32>, vector<32x128xf32>, vector<8x128xf32> -> vector<8x128xf32>
    %39 = arith.addf %37, %38 : vector<8x128xf32>
    %40 = math.tanh %39 : vector<8x128xf32>
    %41 = arith.mulf %40, %19 : vector<8x128xf32>
    %42 = arith.addf %41, %22 : vector<8x128xf32>
    %43 = vector.extract_strided_slice %42 {offsets = [0, 0], sizes = [8, 32], strides = [1, 1]} : vector<8x128xf32> to vector<8x32xf32>
    %44 = vector.extract_strided_slice %42 {offsets = [0, 32], sizes = [8, 32], strides = [1, 1]} : vector<8x128xf32> to vector<8x32xf32>
    %45 = vector.extract_strided_slice %42 {offsets = [0, 64], sizes = [8, 32], strides = [1, 1]} : vector<8x128xf32> to vector<8x32xf32>
    %46 = vector.extract_strided_slice %42 {offsets = [0, 96], sizes = [8, 32], strides = [1, 1]} : vector<8x128xf32> to vector<8x32xf32>
    %47 = arith.mulf %44, %35 : vector<8x32xf32>
    %48 = arith.mulf %43, %45 : vector<8x32xf32>
    %49 = arith.addf %47, %48 : vector<8x32xf32>
    %50 = math.tanh %49 : vector<8x32xf32>
    %51 = arith.mulf %46, %50 : vector<8x32xf32>
    %cst_32 = arith.constant dense<0.000000e+00> : vector<8x128xf32>
    %52 = tpu.matmul %51, %28, %cst_32 {dimension_numbers = #tpu.dot_dimension_numbers<[1], [0], [0], [1], [0, 0, 1, 1], [], []>} : vector<8x32xf32>, vector<32x128xf32>, vector<8x128xf32> -> vector<8x128xf32>
    %53 = arith.addf %52, %32 : vector<8x128xf32>
    %54 = vector.extract_strided_slice %16 {offsets = [8, 0], sizes = [8, 128], strides = [1, 1]} : vector<64x128xf32> to vector<8x128xf32>
    %cst_33 = arith.constant dense<0.000000e+00> : vector<8x128xf32>
    %55 = tpu.matmul %51, %24, %cst_33 {dimension_numbers = #tpu.dot_dimension_numbers<[1], [0], [0], [1], [0, 0, 1, 1], [], []>} : vector<8x32xf32>, vector<32x128xf32>, vector<8x128xf32> -> vector<8x128xf32>
    %56 = arith.addf %54, %55 : vector<8x128xf32>
    %57 = math.tanh %56 : vector<8x128xf32>
    %58 = arith.mulf %57, %19 : vector<8x128xf32>
    %59 = arith.addf %58, %22 : vector<8x128xf32>
    %60 = vector.extract_strided_slice %59 {offsets = [0, 0], sizes = [8, 32], strides = [1, 1]} : vector<8x128xf32> to vector<8x32xf32>
    %61 = vector.extract_strided_slice %59 {offsets = [0, 32], sizes = [8, 32], strides = [1, 1]} : vector<8x128xf32> to vector<8x32xf32>
    %62 = vector.extract_strided_slice %59 {offsets = [0, 64], sizes = [8, 32], strides = [1, 1]} : vector<8x128xf32> to vector<8x32xf32>
    %63 = vector.extract_strided_slice %59 {offsets = [0, 96], sizes = [8, 32], strides = [1, 1]} : vector<8x128xf32> to vector<8x32xf32>
    %64 = arith.mulf %61, %49 : vector<8x32xf32>
    %65 = arith.mulf %60, %62 : vector<8x32xf32>
    %66 = arith.addf %64, %65 : vector<8x32xf32>
    %67 = math.tanh %66 : vector<8x32xf32>
    %68 = arith.mulf %63, %67 : vector<8x32xf32>
    %cst_34 = arith.constant dense<0.000000e+00> : vector<8x128xf32>
    %69 = tpu.matmul %68, %28, %cst_34 {dimension_numbers = #tpu.dot_dimension_numbers<[1], [0], [0], [1], [0, 0, 1, 1], [], []>} : vector<8x32xf32>, vector<32x128xf32>, vector<8x128xf32> -> vector<8x128xf32>
    %70 = arith.addf %69, %32 : vector<8x128xf32>
    %cst_35 = arith.constant dense<0.000000e+00> : vector<8x128xf32>
    %71 = tpu.matmul %34, %26, %cst_35 {dimension_numbers = #tpu.dot_dimension_numbers<[1], [0], [0], [1], [0, 0, 1, 1], [], []>} : vector<8x32xf32>, vector<32x128xf32>, vector<8x128xf32> -> vector<8x128xf32>
    %72 = arith.addf %53, %71 : vector<8x128xf32>
    %73 = math.tanh %72 : vector<8x128xf32>
    %74 = arith.mulf %73, %19 : vector<8x128xf32>
    %75 = arith.addf %74, %22 : vector<8x128xf32>
    %76 = vector.extract_strided_slice %75 {offsets = [0, 0], sizes = [8, 32], strides = [1, 1]} : vector<8x128xf32> to vector<8x32xf32>
    %77 = vector.extract_strided_slice %75 {offsets = [0, 32], sizes = [8, 32], strides = [1, 1]} : vector<8x128xf32> to vector<8x32xf32>
    %78 = vector.extract_strided_slice %75 {offsets = [0, 64], sizes = [8, 32], strides = [1, 1]} : vector<8x128xf32> to vector<8x32xf32>
    %79 = vector.extract_strided_slice %75 {offsets = [0, 96], sizes = [8, 32], strides = [1, 1]} : vector<8x128xf32> to vector<8x32xf32>
    %80 = arith.mulf %77, %36 : vector<8x32xf32>
    %81 = arith.mulf %76, %78 : vector<8x32xf32>
    %82 = arith.addf %80, %81 : vector<8x32xf32>
    %83 = math.tanh %82 : vector<8x32xf32>
    %84 = arith.mulf %79, %83 : vector<8x32xf32>
    %85 = vector.extract_strided_slice %16 {offsets = [16, 0], sizes = [8, 128], strides = [1, 1]} : vector<64x128xf32> to vector<8x128xf32>
    %cst_36 = arith.constant dense<0.000000e+00> : vector<8x128xf32>
    %86 = tpu.matmul %68, %24, %cst_36 {dimension_numbers = #tpu.dot_dimension_numbers<[1], [0], [0], [1], [0, 0, 1, 1], [], []>} : vector<8x32xf32>, vector<32x128xf32>, vector<8x128xf32> -> vector<8x128xf32>
    %87 = arith.addf %85, %86 : vector<8x128xf32>
    %88 = math.tanh %87 : vector<8x128xf32>
    %89 = arith.mulf %88, %19 : vector<8x128xf32>
    %90 = arith.addf %89, %22 : vector<8x128xf32>
    %91 = vector.extract_strided_slice %90 {offsets = [0, 0], sizes = [8, 32], strides = [1, 1]} : vector<8x128xf32> to vector<8x32xf32>
    %92 = vector.extract_strided_slice %90 {offsets = [0, 32], sizes = [8, 32], strides = [1, 1]} : vector<8x128xf32> to vector<8x32xf32>
    %93 = vector.extract_strided_slice %90 {offsets = [0, 64], sizes = [8, 32], strides = [1, 1]} : vector<8x128xf32> to vector<8x32xf32>
    %94 = vector.extract_strided_slice %90 {offsets = [0, 96], sizes = [8, 32], strides = [1, 1]} : vector<8x128xf32> to vector<8x32xf32>
    %95 = arith.mulf %92, %66 : vector<8x32xf32>
    %96 = arith.mulf %91, %93 : vector<8x32xf32>
    %97 = arith.addf %95, %96 : vector<8x32xf32>
    %98 = math.tanh %97 : vector<8x32xf32>
    %99 = arith.mulf %94, %98 : vector<8x32xf32>
    %cst_37 = arith.constant dense<0.000000e+00> : vector<8x128xf32>
    %100 = tpu.matmul %99, %28, %cst_37 {dimension_numbers = #tpu.dot_dimension_numbers<[1], [0], [0], [1], [0, 0, 1, 1], [], []>} : vector<8x32xf32>, vector<32x128xf32>, vector<8x128xf32> -> vector<8x128xf32>
    %101 = arith.addf %100, %32 : vector<8x128xf32>
    %cst_38 = arith.constant dense<0.000000e+00> : vector<8x128xf32>
    %102 = tpu.matmul %84, %26, %cst_38 {dimension_numbers = #tpu.dot_dimension_numbers<[1], [0], [0], [1], [0, 0, 1, 1], [], []>} : vector<8x32xf32>, vector<32x128xf32>, vector<8x128xf32> -> vector<8x128xf32>
    %103 = arith.addf %70, %102 : vector<8x128xf32>
    %104 = math.tanh %103 : vector<8x128xf32>
    %105 = arith.mulf %104, %19 : vector<8x128xf32>
    %106 = arith.addf %105, %22 : vector<8x128xf32>
    %107 = vector.extract_strided_slice %106 {offsets = [0, 0], sizes = [8, 32], strides = [1, 1]} : vector<8x128xf32> to vector<8x32xf32>
    %108 = vector.extract_strided_slice %106 {offsets = [0, 32], sizes = [8, 32], strides = [1, 1]} : vector<8x128xf32> to vector<8x32xf32>
    %109 = vector.extract_strided_slice %106 {offsets = [0, 64], sizes = [8, 32], strides = [1, 1]} : vector<8x128xf32> to vector<8x32xf32>
    %110 = vector.extract_strided_slice %106 {offsets = [0, 96], sizes = [8, 32], strides = [1, 1]} : vector<8x128xf32> to vector<8x32xf32>
    %111 = arith.mulf %108, %82 : vector<8x32xf32>
    %112 = arith.mulf %107, %109 : vector<8x32xf32>
    %113 = arith.addf %111, %112 : vector<8x32xf32>
    %114 = math.tanh %113 : vector<8x32xf32>
    %115 = arith.mulf %110, %114 : vector<8x32xf32>
    %116 = vector.extract_strided_slice %16 {offsets = [24, 0], sizes = [8, 128], strides = [1, 1]} : vector<64x128xf32> to vector<8x128xf32>
    %cst_39 = arith.constant dense<0.000000e+00> : vector<8x128xf32>
    %117 = tpu.matmul %99, %24, %cst_39 {dimension_numbers = #tpu.dot_dimension_numbers<[1], [0], [0], [1], [0, 0, 1, 1], [], []>} : vector<8x32xf32>, vector<32x128xf32>, vector<8x128xf32> -> vector<8x128xf32>
    %118 = arith.addf %116, %117 : vector<8x128xf32>
    %119 = math.tanh %118 : vector<8x128xf32>
    %120 = arith.mulf %119, %19 : vector<8x128xf32>
    %121 = arith.addf %120, %22 : vector<8x128xf32>
    %122 = vector.extract_strided_slice %121 {offsets = [0, 0], sizes = [8, 32], strides = [1, 1]} : vector<8x128xf32> to vector<8x32xf32>
    %123 = vector.extract_strided_slice %121 {offsets = [0, 32], sizes = [8, 32], strides = [1, 1]} : vector<8x128xf32> to vector<8x32xf32>
    %124 = vector.extract_strided_slice %121 {offsets = [0, 64], sizes = [8, 32], strides = [1, 1]} : vector<8x128xf32> to vector<8x32xf32>
    %125 = vector.extract_strided_slice %121 {offsets = [0, 96], sizes = [8, 32], strides = [1, 1]} : vector<8x128xf32> to vector<8x32xf32>
    %126 = arith.mulf %123, %97 : vector<8x32xf32>
    %127 = arith.mulf %122, %124 : vector<8x32xf32>
    %128 = arith.addf %126, %127 : vector<8x32xf32>
    %129 = math.tanh %128 : vector<8x32xf32>
    %130 = arith.mulf %125, %129 : vector<8x32xf32>
    %cst_40 = arith.constant dense<0.000000e+00> : vector<8x128xf32>
    %131 = tpu.matmul %130, %28, %cst_40 {dimension_numbers = #tpu.dot_dimension_numbers<[1], [0], [0], [1], [0, 0, 1, 1], [], []>} : vector<8x32xf32>, vector<32x128xf32>, vector<8x128xf32> -> vector<8x128xf32>
    %132 = arith.addf %131, %32 : vector<8x128xf32>
    %cst_41 = arith.constant dense<0.000000e+00> : vector<8x128xf32>
    %133 = tpu.matmul %115, %26, %cst_41 {dimension_numbers = #tpu.dot_dimension_numbers<[1], [0], [0], [1], [0, 0, 1, 1], [], []>} : vector<8x32xf32>, vector<32x128xf32>, vector<8x128xf32> -> vector<8x128xf32>
    %134 = arith.addf %101, %133 : vector<8x128xf32>
    %135 = math.tanh %134 : vector<8x128xf32>
    %136 = arith.mulf %135, %19 : vector<8x128xf32>
    %137 = arith.addf %136, %22 : vector<8x128xf32>
    %138 = vector.extract_strided_slice %137 {offsets = [0, 0], sizes = [8, 32], strides = [1, 1]} : vector<8x128xf32> to vector<8x32xf32>
    %139 = vector.extract_strided_slice %137 {offsets = [0, 32], sizes = [8, 32], strides = [1, 1]} : vector<8x128xf32> to vector<8x32xf32>
    %140 = vector.extract_strided_slice %137 {offsets = [0, 64], sizes = [8, 32], strides = [1, 1]} : vector<8x128xf32> to vector<8x32xf32>
    %141 = vector.extract_strided_slice %137 {offsets = [0, 96], sizes = [8, 32], strides = [1, 1]} : vector<8x128xf32> to vector<8x32xf32>
    %142 = arith.mulf %139, %113 : vector<8x32xf32>
    %143 = arith.mulf %138, %140 : vector<8x32xf32>
    %144 = arith.addf %142, %143 : vector<8x32xf32>
    %145 = math.tanh %144 : vector<8x32xf32>
    %146 = arith.mulf %141, %145 : vector<8x32xf32>
    %147 = vector.extract_strided_slice %16 {offsets = [32, 0], sizes = [8, 128], strides = [1, 1]} : vector<64x128xf32> to vector<8x128xf32>
    %cst_42 = arith.constant dense<0.000000e+00> : vector<8x128xf32>
    %148 = tpu.matmul %130, %24, %cst_42 {dimension_numbers = #tpu.dot_dimension_numbers<[1], [0], [0], [1], [0, 0, 1, 1], [], []>} : vector<8x32xf32>, vector<32x128xf32>, vector<8x128xf32> -> vector<8x128xf32>
    %149 = arith.addf %147, %148 : vector<8x128xf32>
    %150 = math.tanh %149 : vector<8x128xf32>
    %151 = arith.mulf %150, %19 : vector<8x128xf32>
    %152 = arith.addf %151, %22 : vector<8x128xf32>
    %153 = vector.extract_strided_slice %152 {offsets = [0, 0], sizes = [8, 32], strides = [1, 1]} : vector<8x128xf32> to vector<8x32xf32>
    %154 = vector.extract_strided_slice %152 {offsets = [0, 32], sizes = [8, 32], strides = [1, 1]} : vector<8x128xf32> to vector<8x32xf32>
    %155 = vector.extract_strided_slice %152 {offsets = [0, 64], sizes = [8, 32], strides = [1, 1]} : vector<8x128xf32> to vector<8x32xf32>
    %156 = vector.extract_strided_slice %152 {offsets = [0, 96], sizes = [8, 32], strides = [1, 1]} : vector<8x128xf32> to vector<8x32xf32>
    %157 = arith.mulf %154, %128 : vector<8x32xf32>
    %158 = arith.mulf %153, %155 : vector<8x32xf32>
    %159 = arith.addf %157, %158 : vector<8x32xf32>
    %160 = math.tanh %159 : vector<8x32xf32>
    %161 = arith.mulf %156, %160 : vector<8x32xf32>
    %cst_43 = arith.constant dense<0.000000e+00> : vector<8x128xf32>
    %162 = tpu.matmul %161, %28, %cst_43 {dimension_numbers = #tpu.dot_dimension_numbers<[1], [0], [0], [1], [0, 0, 1, 1], [], []>} : vector<8x32xf32>, vector<32x128xf32>, vector<8x128xf32> -> vector<8x128xf32>
    %163 = arith.addf %162, %32 : vector<8x128xf32>
    %cst_44 = arith.constant dense<0.000000e+00> : vector<8x128xf32>
    %164 = tpu.matmul %146, %26, %cst_44 {dimension_numbers = #tpu.dot_dimension_numbers<[1], [0], [0], [1], [0, 0, 1, 1], [], []>} : vector<8x32xf32>, vector<32x128xf32>, vector<8x128xf32> -> vector<8x128xf32>
    %165 = arith.addf %132, %164 : vector<8x128xf32>
    %166 = math.tanh %165 : vector<8x128xf32>
    %167 = arith.mulf %166, %19 : vector<8x128xf32>
    %168 = arith.addf %167, %22 : vector<8x128xf32>
    %169 = vector.extract_strided_slice %168 {offsets = [0, 0], sizes = [8, 32], strides = [1, 1]} : vector<8x128xf32> to vector<8x32xf32>
    %170 = vector.extract_strided_slice %168 {offsets = [0, 32], sizes = [8, 32], strides = [1, 1]} : vector<8x128xf32> to vector<8x32xf32>
    %171 = vector.extract_strided_slice %168 {offsets = [0, 64], sizes = [8, 32], strides = [1, 1]} : vector<8x128xf32> to vector<8x32xf32>
    %172 = vector.extract_strided_slice %168 {offsets = [0, 96], sizes = [8, 32], strides = [1, 1]} : vector<8x128xf32> to vector<8x32xf32>
    %173 = arith.mulf %170, %144 : vector<8x32xf32>
    %174 = arith.mulf %169, %171 : vector<8x32xf32>
    %175 = arith.addf %173, %174 : vector<8x32xf32>
    %176 = math.tanh %175 : vector<8x32xf32>
    %177 = arith.mulf %172, %176 : vector<8x32xf32>
    %178 = vector.extract_strided_slice %16 {offsets = [40, 0], sizes = [8, 128], strides = [1, 1]} : vector<64x128xf32> to vector<8x128xf32>
    %cst_45 = arith.constant dense<0.000000e+00> : vector<8x128xf32>
    %179 = tpu.matmul %161, %24, %cst_45 {dimension_numbers = #tpu.dot_dimension_numbers<[1], [0], [0], [1], [0, 0, 1, 1], [], []>} : vector<8x32xf32>, vector<32x128xf32>, vector<8x128xf32> -> vector<8x128xf32>
    %180 = arith.addf %178, %179 : vector<8x128xf32>
    %181 = math.tanh %180 : vector<8x128xf32>
    %182 = arith.mulf %181, %19 : vector<8x128xf32>
    %183 = arith.addf %182, %22 : vector<8x128xf32>
    %184 = vector.extract_strided_slice %183 {offsets = [0, 0], sizes = [8, 32], strides = [1, 1]} : vector<8x128xf32> to vector<8x32xf32>
    %185 = vector.extract_strided_slice %183 {offsets = [0, 32], sizes = [8, 32], strides = [1, 1]} : vector<8x128xf32> to vector<8x32xf32>
    %186 = vector.extract_strided_slice %183 {offsets = [0, 64], sizes = [8, 32], strides = [1, 1]} : vector<8x128xf32> to vector<8x32xf32>
    %187 = vector.extract_strided_slice %183 {offsets = [0, 96], sizes = [8, 32], strides = [1, 1]} : vector<8x128xf32> to vector<8x32xf32>
    %188 = arith.mulf %185, %159 : vector<8x32xf32>
    %189 = arith.mulf %184, %186 : vector<8x32xf32>
    %190 = arith.addf %188, %189 : vector<8x32xf32>
    %191 = math.tanh %190 : vector<8x32xf32>
    %192 = arith.mulf %187, %191 : vector<8x32xf32>
    %cst_46 = arith.constant dense<0.000000e+00> : vector<8x128xf32>
    %193 = tpu.matmul %192, %28, %cst_46 {dimension_numbers = #tpu.dot_dimension_numbers<[1], [0], [0], [1], [0, 0, 1, 1], [], []>} : vector<8x32xf32>, vector<32x128xf32>, vector<8x128xf32> -> vector<8x128xf32>
    %194 = arith.addf %193, %32 : vector<8x128xf32>
    %cst_47 = arith.constant dense<0.000000e+00> : vector<8x128xf32>
    %195 = tpu.matmul %177, %26, %cst_47 {dimension_numbers = #tpu.dot_dimension_numbers<[1], [0], [0], [1], [0, 0, 1, 1], [], []>} : vector<8x32xf32>, vector<32x128xf32>, vector<8x128xf32> -> vector<8x128xf32>
    %196 = arith.addf %163, %195 : vector<8x128xf32>
    %197 = math.tanh %196 : vector<8x128xf32>
    %198 = arith.mulf %197, %19 : vector<8x128xf32>
    %199 = arith.addf %198, %22 : vector<8x128xf32>
    %200 = vector.extract_strided_slice %199 {offsets = [0, 0], sizes = [8, 32], strides = [1, 1]} : vector<8x128xf32> to vector<8x32xf32>
    %201 = vector.extract_strided_slice %199 {offsets = [0, 32], sizes = [8, 32], strides = [1, 1]} : vector<8x128xf32> to vector<8x32xf32>
    %202 = vector.extract_strided_slice %199 {offsets = [0, 64], sizes = [8, 32], strides = [1, 1]} : vector<8x128xf32> to vector<8x32xf32>
    %203 = vector.extract_strided_slice %199 {offsets = [0, 96], sizes = [8, 32], strides = [1, 1]} : vector<8x128xf32> to vector<8x32xf32>
    %204 = arith.mulf %201, %175 : vector<8x32xf32>
    %205 = arith.mulf %200, %202 : vector<8x32xf32>
    %206 = arith.addf %204, %205 : vector<8x32xf32>
    %207 = math.tanh %206 : vector<8x32xf32>
    %208 = arith.mulf %203, %207 : vector<8x32xf32>
    %209 = vector.extract_strided_slice %16 {offsets = [48, 0], sizes = [8, 128], strides = [1, 1]} : vector<64x128xf32> to vector<8x128xf32>
    %cst_48 = arith.constant dense<0.000000e+00> : vector<8x128xf32>
    %210 = tpu.matmul %192, %24, %cst_48 {dimension_numbers = #tpu.dot_dimension_numbers<[1], [0], [0], [1], [0, 0, 1, 1], [], []>} : vector<8x32xf32>, vector<32x128xf32>, vector<8x128xf32> -> vector<8x128xf32>
    %211 = arith.addf %209, %210 : vector<8x128xf32>
    %212 = math.tanh %211 : vector<8x128xf32>
    %213 = arith.mulf %212, %19 : vector<8x128xf32>
    %214 = arith.addf %213, %22 : vector<8x128xf32>
    %215 = vector.extract_strided_slice %214 {offsets = [0, 0], sizes = [8, 32], strides = [1, 1]} : vector<8x128xf32> to vector<8x32xf32>
    %216 = vector.extract_strided_slice %214 {offsets = [0, 32], sizes = [8, 32], strides = [1, 1]} : vector<8x128xf32> to vector<8x32xf32>
    %217 = vector.extract_strided_slice %214 {offsets = [0, 64], sizes = [8, 32], strides = [1, 1]} : vector<8x128xf32> to vector<8x32xf32>
    %218 = vector.extract_strided_slice %214 {offsets = [0, 96], sizes = [8, 32], strides = [1, 1]} : vector<8x128xf32> to vector<8x32xf32>
    %219 = arith.mulf %216, %190 : vector<8x32xf32>
    %220 = arith.mulf %215, %217 : vector<8x32xf32>
    %221 = arith.addf %219, %220 : vector<8x32xf32>
    %222 = math.tanh %221 : vector<8x32xf32>
    %223 = arith.mulf %218, %222 : vector<8x32xf32>
    %cst_49 = arith.constant dense<0.000000e+00> : vector<8x128xf32>
    %224 = tpu.matmul %223, %28, %cst_49 {dimension_numbers = #tpu.dot_dimension_numbers<[1], [0], [0], [1], [0, 0, 1, 1], [], []>} : vector<8x32xf32>, vector<32x128xf32>, vector<8x128xf32> -> vector<8x128xf32>
    %225 = arith.addf %224, %32 : vector<8x128xf32>
    %cst_50 = arith.constant dense<0.000000e+00> : vector<8x128xf32>
    %226 = tpu.matmul %208, %26, %cst_50 {dimension_numbers = #tpu.dot_dimension_numbers<[1], [0], [0], [1], [0, 0, 1, 1], [], []>} : vector<8x32xf32>, vector<32x128xf32>, vector<8x128xf32> -> vector<8x128xf32>
    %227 = arith.addf %194, %226 : vector<8x128xf32>
    %228 = math.tanh %227 : vector<8x128xf32>
    %229 = arith.mulf %228, %19 : vector<8x128xf32>
    %230 = arith.addf %229, %22 : vector<8x128xf32>
    %231 = vector.extract_strided_slice %230 {offsets = [0, 0], sizes = [8, 32], strides = [1, 1]} : vector<8x128xf32> to vector<8x32xf32>
    %232 = vector.extract_strided_slice %230 {offsets = [0, 32], sizes = [8, 32], strides = [1, 1]} : vector<8x128xf32> to vector<8x32xf32>
    %233 = vector.extract_strided_slice %230 {offsets = [0, 64], sizes = [8, 32], strides = [1, 1]} : vector<8x128xf32> to vector<8x32xf32>
    %234 = vector.extract_strided_slice %230 {offsets = [0, 96], sizes = [8, 32], strides = [1, 1]} : vector<8x128xf32> to vector<8x32xf32>
    %235 = arith.mulf %232, %206 : vector<8x32xf32>
    %236 = arith.mulf %231, %233 : vector<8x32xf32>
    %237 = arith.addf %235, %236 : vector<8x32xf32>
    %238 = math.tanh %237 : vector<8x32xf32>
    %239 = arith.mulf %234, %238 : vector<8x32xf32>
    %240 = vector.extract_strided_slice %16 {offsets = [56, 0], sizes = [8, 128], strides = [1, 1]} : vector<64x128xf32> to vector<8x128xf32>
    %cst_51 = arith.constant dense<0.000000e+00> : vector<8x128xf32>
    %241 = tpu.matmul %223, %24, %cst_51 {dimension_numbers = #tpu.dot_dimension_numbers<[1], [0], [0], [1], [0, 0, 1, 1], [], []>} : vector<8x32xf32>, vector<32x128xf32>, vector<8x128xf32> -> vector<8x128xf32>
    %242 = arith.addf %240, %241 : vector<8x128xf32>
    %243 = math.tanh %242 : vector<8x128xf32>
    %244 = arith.mulf %243, %19 : vector<8x128xf32>
    %245 = arith.addf %244, %22 : vector<8x128xf32>
    %246 = vector.extract_strided_slice %245 {offsets = [0, 0], sizes = [8, 32], strides = [1, 1]} : vector<8x128xf32> to vector<8x32xf32>
    %247 = vector.extract_strided_slice %245 {offsets = [0, 32], sizes = [8, 32], strides = [1, 1]} : vector<8x128xf32> to vector<8x32xf32>
    %248 = vector.extract_strided_slice %245 {offsets = [0, 64], sizes = [8, 32], strides = [1, 1]} : vector<8x128xf32> to vector<8x32xf32>
    %249 = vector.extract_strided_slice %245 {offsets = [0, 96], sizes = [8, 32], strides = [1, 1]} : vector<8x128xf32> to vector<8x32xf32>
    %250 = arith.mulf %247, %221 : vector<8x32xf32>
    %251 = arith.mulf %246, %248 : vector<8x32xf32>
    %252 = arith.addf %250, %251 : vector<8x32xf32>
    %253 = math.tanh %252 : vector<8x32xf32>
    %254 = arith.mulf %249, %253 : vector<8x32xf32>
    %cst_52 = arith.constant dense<0.000000e+00> : vector<8x128xf32>
    %255 = tpu.matmul %254, %28, %cst_52 {dimension_numbers = #tpu.dot_dimension_numbers<[1], [0], [0], [1], [0, 0, 1, 1], [], []>} : vector<8x32xf32>, vector<32x128xf32>, vector<8x128xf32> -> vector<8x128xf32>
    %256 = arith.addf %255, %32 : vector<8x128xf32>
    %cst_53 = arith.constant dense<0.000000e+00> : vector<8x128xf32>
    %257 = tpu.matmul %239, %26, %cst_53 {dimension_numbers = #tpu.dot_dimension_numbers<[1], [0], [0], [1], [0, 0, 1, 1], [], []>} : vector<8x32xf32>, vector<32x128xf32>, vector<8x128xf32> -> vector<8x128xf32>
    %258 = arith.addf %225, %257 : vector<8x128xf32>
    %259 = math.tanh %258 : vector<8x128xf32>
    %260 = arith.mulf %259, %19 : vector<8x128xf32>
    %261 = arith.addf %260, %22 : vector<8x128xf32>
    %262 = vector.extract_strided_slice %261 {offsets = [0, 0], sizes = [8, 32], strides = [1, 1]} : vector<8x128xf32> to vector<8x32xf32>
    %263 = vector.extract_strided_slice %261 {offsets = [0, 32], sizes = [8, 32], strides = [1, 1]} : vector<8x128xf32> to vector<8x32xf32>
    %264 = vector.extract_strided_slice %261 {offsets = [0, 64], sizes = [8, 32], strides = [1, 1]} : vector<8x128xf32> to vector<8x32xf32>
    %265 = vector.extract_strided_slice %261 {offsets = [0, 96], sizes = [8, 32], strides = [1, 1]} : vector<8x128xf32> to vector<8x32xf32>
    %266 = arith.mulf %263, %237 : vector<8x32xf32>
    %267 = arith.mulf %262, %264 : vector<8x32xf32>
    %268 = arith.addf %266, %267 : vector<8x32xf32>
    %269 = math.tanh %268 : vector<8x32xf32>
    %270 = arith.mulf %265, %269 : vector<8x32xf32>
    %cst_54 = arith.constant dense<0.000000e+00> : vector<8x128xf32>
    %271 = tpu.matmul %270, %26, %cst_54 {dimension_numbers = #tpu.dot_dimension_numbers<[1], [0], [0], [1], [0, 0, 1, 1], [], []>} : vector<8x32xf32>, vector<32x128xf32>, vector<8x128xf32> -> vector<8x128xf32>
    %272 = arith.addf %256, %271 : vector<8x128xf32>
    %273 = math.tanh %272 : vector<8x128xf32>
    %274 = arith.mulf %273, %19 : vector<8x128xf32>
    %275 = arith.addf %274, %22 : vector<8x128xf32>
    %276 = vector.extract_strided_slice %275 {offsets = [0, 0], sizes = [8, 32], strides = [1, 1]} : vector<8x128xf32> to vector<8x32xf32>
    %277 = vector.extract_strided_slice %275 {offsets = [0, 32], sizes = [8, 32], strides = [1, 1]} : vector<8x128xf32> to vector<8x32xf32>
    %278 = vector.extract_strided_slice %275 {offsets = [0, 64], sizes = [8, 32], strides = [1, 1]} : vector<8x128xf32> to vector<8x32xf32>
    %279 = vector.extract_strided_slice %275 {offsets = [0, 96], sizes = [8, 32], strides = [1, 1]} : vector<8x128xf32> to vector<8x32xf32>
    %280 = arith.mulf %277, %268 : vector<8x32xf32>
    %281 = arith.mulf %276, %278 : vector<8x32xf32>
    %282 = arith.addf %280, %281 : vector<8x32xf32>
    %283 = math.tanh %282 : vector<8x32xf32>
    %284 = arith.mulf %279, %283 : vector<8x32xf32>
    %c0_55 = arith.constant 0 : index
    %c0_56 = arith.constant 0 : index
    %c0_57 = arith.constant 0 : index
    %285 = vector.load %arg6[%c0_55, %c0_56, %c0_57] : memref<8x32x4xf32, #tpu.memory_space<vmem>>, vector<1x32x4xf32>
    %286 = vector.shape_cast %285 : vector<1x32x4xf32> to vector<32x4xf32>
    %cst_58 = arith.constant dense<0.000000e+00> : vector<8x4xf32>
    %287 = tpu.matmul %84, %286, %cst_58 {dimension_numbers = #tpu.dot_dimension_numbers<[1], [0], [0], [1], [0, 0, 1, 1], [], []>} : vector<8x32xf32>, vector<32x4xf32>, vector<8x4xf32> -> vector<8x4xf32>
    %c1_59 = arith.constant 1 : index
    %c0_60 = arith.constant 0 : index
    %c0_61 = arith.constant 0 : index
    %288 = vector.load %arg6[%c1_59, %c0_60, %c0_61] : memref<8x32x4xf32, #tpu.memory_space<vmem>>, vector<1x32x4xf32>
    %289 = vector.shape_cast %288 : vector<1x32x4xf32> to vector<32x4xf32>
    %cst_62 = arith.constant dense<0.000000e+00> : vector<8x4xf32>
    %290 = tpu.matmul %115, %289, %cst_62 {dimension_numbers = #tpu.dot_dimension_numbers<[1], [0], [0], [1], [0, 0, 1, 1], [], []>} : vector<8x32xf32>, vector<32x4xf32>, vector<8x4xf32> -> vector<8x4xf32>
    %c2 = arith.constant 2 : index
    %c0_63 = arith.constant 0 : index
    %c0_64 = arith.constant 0 : index
    %291 = vector.load %arg6[%c2, %c0_63, %c0_64] : memref<8x32x4xf32, #tpu.memory_space<vmem>>, vector<1x32x4xf32>
    %292 = vector.shape_cast %291 : vector<1x32x4xf32> to vector<32x4xf32>
    %cst_65 = arith.constant dense<0.000000e+00> : vector<8x4xf32>
    %293 = tpu.matmul %146, %292, %cst_65 {dimension_numbers = #tpu.dot_dimension_numbers<[1], [0], [0], [1], [0, 0, 1, 1], [], []>} : vector<8x32xf32>, vector<32x4xf32>, vector<8x4xf32> -> vector<8x4xf32>
    %c3 = arith.constant 3 : index
    %c0_66 = arith.constant 0 : index
    %c0_67 = arith.constant 0 : index
    %294 = vector.load %arg6[%c3, %c0_66, %c0_67] : memref<8x32x4xf32, #tpu.memory_space<vmem>>, vector<1x32x4xf32>
    %295 = vector.shape_cast %294 : vector<1x32x4xf32> to vector<32x4xf32>
    %cst_68 = arith.constant dense<0.000000e+00> : vector<8x4xf32>
    %296 = tpu.matmul %177, %295, %cst_68 {dimension_numbers = #tpu.dot_dimension_numbers<[1], [0], [0], [1], [0, 0, 1, 1], [], []>} : vector<8x32xf32>, vector<32x4xf32>, vector<8x4xf32> -> vector<8x4xf32>
    %c4 = arith.constant 4 : index
    %c0_69 = arith.constant 0 : index
    %c0_70 = arith.constant 0 : index
    %297 = vector.load %arg6[%c4, %c0_69, %c0_70] : memref<8x32x4xf32, #tpu.memory_space<vmem>>, vector<1x32x4xf32>
    %298 = vector.shape_cast %297 : vector<1x32x4xf32> to vector<32x4xf32>
    %cst_71 = arith.constant dense<0.000000e+00> : vector<8x4xf32>
    %299 = tpu.matmul %208, %298, %cst_71 {dimension_numbers = #tpu.dot_dimension_numbers<[1], [0], [0], [1], [0, 0, 1, 1], [], []>} : vector<8x32xf32>, vector<32x4xf32>, vector<8x4xf32> -> vector<8x4xf32>
    %c5 = arith.constant 5 : index
    %c0_72 = arith.constant 0 : index
    %c0_73 = arith.constant 0 : index
    %300 = vector.load %arg6[%c5, %c0_72, %c0_73] : memref<8x32x4xf32, #tpu.memory_space<vmem>>, vector<1x32x4xf32>
    %301 = vector.shape_cast %300 : vector<1x32x4xf32> to vector<32x4xf32>
    %cst_74 = arith.constant dense<0.000000e+00> : vector<8x4xf32>
    %302 = tpu.matmul %239, %301, %cst_74 {dimension_numbers = #tpu.dot_dimension_numbers<[1], [0], [0], [1], [0, 0, 1, 1], [], []>} : vector<8x32xf32>, vector<32x4xf32>, vector<8x4xf32> -> vector<8x4xf32>
    %c6 = arith.constant 6 : index
    %c0_75 = arith.constant 0 : index
    %c0_76 = arith.constant 0 : index
    %303 = vector.load %arg6[%c6, %c0_75, %c0_76] : memref<8x32x4xf32, #tpu.memory_space<vmem>>, vector<1x32x4xf32>
    %304 = vector.shape_cast %303 : vector<1x32x4xf32> to vector<32x4xf32>
    %cst_77 = arith.constant dense<0.000000e+00> : vector<8x4xf32>
    %305 = tpu.matmul %270, %304, %cst_77 {dimension_numbers = #tpu.dot_dimension_numbers<[1], [0], [0], [1], [0, 0, 1, 1], [], []>} : vector<8x32xf32>, vector<32x4xf32>, vector<8x4xf32> -> vector<8x4xf32>
    %c7 = arith.constant 7 : index
    %c0_78 = arith.constant 0 : index
    %c0_79 = arith.constant 0 : index
    %306 = vector.load %arg6[%c7, %c0_78, %c0_79] : memref<8x32x4xf32, #tpu.memory_space<vmem>>, vector<1x32x4xf32>
    %307 = vector.shape_cast %306 : vector<1x32x4xf32> to vector<32x4xf32>
    %cst_80 = arith.constant dense<0.000000e+00> : vector<8x4xf32>
    %308 = tpu.matmul %284, %307, %cst_80 {dimension_numbers = #tpu.dot_dimension_numbers<[1], [0], [0], [1], [0, 0, 1, 1], [], []>} : vector<8x32xf32>, vector<32x4xf32>, vector<8x4xf32> -> vector<8x4xf32>
    %309 = arith.addf %287, %290 : vector<8x4xf32>
    %310 = arith.addf %309, %293 : vector<8x4xf32>
    %311 = arith.addf %310, %296 : vector<8x4xf32>
    %312 = arith.addf %311, %299 : vector<8x4xf32>
    %313 = arith.addf %312, %302 : vector<8x4xf32>
    %314 = arith.addf %313, %305 : vector<8x4xf32>
    %315 = arith.addf %314, %308 : vector<8x4xf32>
    %c0_81 = arith.constant 0 : index
    %c0_82 = arith.constant 0 : index
    %316 = vector.load %arg7[%c0_81, %c0_82] : memref<1x4xf32, #tpu.memory_space<vmem>>, vector<1x4xf32>
    %317 = vector.broadcast %316 : vector<1x4xf32> to vector<8x4xf32>
    %318 = arith.addf %315, %317 : vector<8x4xf32>
    %c0_83 = arith.constant 0 : index
    %c0_84 = arith.constant 0 : index
    %319 = vector.load %arg9[%c0_83, %c0_84] : memref<8x4xf32, #tpu.memory_space<vmem>>, vector<8x4xf32>
    tpu.vector_store %arg9[%c0_83, %c0_84], %318 {strides = array<i32>} : memref<8x4xf32, #tpu.memory_space<vmem>>, vector<8x4xf32>,
    return
  }
}

</mosaic_0001>

<bundles_post_ra>
// kernel: tpu_custom_call.1
= control target key start
LH: loop header
LB: loop body
LE: loop exit
PB: predicated region body
PF: predicated region fallthrough
CT: control target
= control target key end

     0   :  { %v3718_v0 = vmov 0   ;;  %v3719_v4 = vmov 0.0   ;;  %vm3720_vm0 = vmmov 0   ;;  %vm129_vm1 = vcmask 261120   ;;  %s3721_s16 = smov 64   ;;  %s3722_s17 = smov 32   ;;  %s4605_s0 = inlined_call_operand.vmem [shape: f32[64,1], index: 0, kind: input, shape index: {}]   ;;  %s4606_s3 = inlined_call_operand.vmem [shape: f32[2,32,128], index: 3, kind: input, shape index: {}]   ;;  %s4607_s4 = inlined_call_operand.vmem [shape: f32[2,32,128], index: 4, kind: input, shape index: {}]   ;;  %s4608_s1 = inlined_call_operand.vmem [shape: f32[1,32], index: 1, kind: input, shape index: {}]   ;;  %s4609_s2 = inlined_call_operand.vmem [shape: f32[1,32], index: 2, kind: input, shape index: {}]   ;;  %s4610_s5 = inlined_call_operand.vmem [shape: f32[2,1,128], index: 5, kind: input, shape index: {}]   ;;  %s4611_s8 = inlined_call_operand.vmem [shape: f32[2,128], index: 8, kind: input, shape index: {}]   ;;  %s4612_s6 = inlined_call_operand.vmem [shape: f32[8,32,4], index: 6, kind: input, shape index: {}]   ;;  %s4613_s7 = inlined_call_operand.vmem [shape: f32[1,4], index: 7, kind: input, shape index: {}]   ;;  %s4614_s9 = inlined_call_operand.vmem [shape: f32[8,4], index: 9, kind: output, shape index: {}]  }
   0x1   :  { %3640 = vset.pattern.permute.xlu0 %v3718_v0  ;;  %v32_v1 = vld [vmem:[%s4605_s0] sm:$0xff]  ;;  %3641 = vset.pattern.permute.xlu1 %v3718_v0  ;;  %v121_v2 = vld [vmem:[%s4606_s3 + $0x18] sm:$0xff]  ;;  %v120_v3 = vld [vmem:[%s4606_s3 + $0x10] sm:$0xff]  ;;  %vm3003_vm2 = vcmask 31744  }
   0x2   :  { %43 = vperm.xlu0 %3640, %v32_v1   ;;  %3283 = vmatprep.subr.mxu1 %v3719_v4  ;;  %v33_v5 = vld [vmem:[%s4605_s0 + $0x8] sm:$0xff]  ;;  %v3789_v6 = vld [vmem:[%s4607_s4 + $0x18] sm:$0xff]  ;;  %v3798_v8 = vld [vmem:[%s4607_s4 + $0x10] sm:$0xff] }
   0x3   :  { %3263 = vmatprep.subr.mxu0 %v121_v2  ;;  %3284 = vmatpush3.msra.mxu1 %v3789_v6  ;;  %v119_v7 = vld [vmem:[%s4606_s3 + $0x8] sm:$0xff]  ;;  %v118_v9 = vld [vmem:[%s4606_s3] sm:$0xff]  ;;  %v34_v36 = vld [vmem:[%s4605_s0 + $0x10] sm:$0xff] }
   0x4   :  { %3264 = vmatpush3.msra.mxu0 %v121_v2  ;;  %3285 = vmatprep.subr.mxu1 %v3719_v4  ;;  %v3807_v10 = vld [vmem:[%s4607_s4 + $0x8] sm:$0xff]  ;;  %v3814_v11 = vld [vmem:[%s4607_s4] sm:$0xff]  ;;  %v38_v38 = vld [vmem:[%s4605_s0 + $0x30] sm:$0xff] }
   0x5   :  { %3265 = vmatprep.subr.mxu0 %v120_v3  ;;  %3286 = vmatpush3.msra.mxu1 %v3798_v8  ;;  %v3829_v12 = vld [vmem:[%s4608_s1] ss:$0 sm:$0xff]  ;;  %v3866_v31 = vld [vmem:[%s4611_s8 + $0x1] ss:$0 sm:$0xff]  ;;  %v35_v46 = vld [vmem:[%s4605_s0 + $0x18] sm:$0xff] }
   0x6   :  { %48 = vperm.xlu0 %3640, %v33_v5   ;;  %3266 = vmatpush3.msra.mxu0 %v120_v3  ;;  %v3834_v14 = vld [vmem:[%s4609_s2] ss:$0 sm:$0xff]  ;;  %v37_v48 = vld [vmem:[%s4605_s0 + $0x28] sm:$0xff]  ;;  %v39_v49 = vld [vmem:[%s4605_s0 + $0x38] sm:$0xff] }
   0x7   :  { %3267 = vmatprep.subr.mxu0 %v119_v7  ;;  %3287 = vmatprep.subr.mxu1 %v3719_v4  ;;  %v3855_v25 = vld [vmem:[%s4610_s5] ss:$0 sm:$0xff]  ;;  %v3900_v50 = vld [vmem:[%s4606_s3 + $0x38] sm:$0xff]  ;;  %v3905_v51 = vld [vmem:[%s4606_s3 + $0x30] sm:$0xff] }
   0x8   :  { %3268 = vmatpush3.msra.mxu0 %v119_v7  ;;  %3288 = vmatpush3.msra.mxu1 %v3807_v10  ;;  %v3861_v29 = vld [vmem:[%s4611_s8] ss:$0 sm:$0xff]  ;;  %v3912_v52 = vld [vmem:[%s4606_s3 + $0x28] sm:$0xff] }
   0x9   :  { %3269 = vmatprep.subr.mxu0 %v118_v9  ;;  %3289 = vmatprep.subr.mxu1 %v3719_v4  ;;  %v36_v37 = vld [vmem:[%s4605_s0 + $0x20] sm:$0xff] }
   0xa   :  { %3270 = vmatpush3.msra.mxu0 %v118_v9  ;;  %3290 = vmatpush3.msra.mxu1 %v3814_v11  ;;  %v3919_v53 = vld [vmem:[%s4606_s3 + $0x20] sm:$0xff] }
   0xb   :  { %3291 = vmatprep.mubr.msk.f32.mxu1 %vm3720_vm0, %v3719_v4  ;;  %3305 = vmatprep.subr.mxu0 %v3719_v4 }
   0xc   :  { %3292 = vmatmul.mubr.f32.vlgmr.msra.gmra.mxu1 %v3719_v4  ;;  %3294 = vmatprep.subr.mxu1 %v3719_v4 }
   0xd   :  { %3302 = vmatprep.mubr.msk.f32.mxu1 %vm3720_vm0, %v3719_v4  ;;  %3295 = vmatpush3.msra.mxu1 %v3900_v50 }
   0xe   :  { %3296 = vmatprep.subr.mxu1 %v3719_v4 }
   0xf   :  { %3297 = vmatpush3.msra.mxu1 %v3905_v51 }
  0x10   :  { %3298 = vmatprep.subr.mxu1 %v3719_v4 }
  0x11   :  { %3299 = vmatpush3.msra.mxu1 %v3912_v52 }
  0x12   :  { %3300 = vmatprep.subr.mxu1 %v3719_v4 }
  0x13   :  { %3301 = vmatpush3.msra.mxu1 %v3919_v53 }
  0x14   :  { %3316 = vmatprep.subr.mxu1 %v3719_v4 }
  0x7d   :  { %v44_v13 = vpop.permute.xlu0 %43 }
  0x7e   :  { %v87_v15 = vmul.f32 %v3829_v12, %v44_v13 }
  0x80   :  { %v102_v16 = vadd.f32 %v3834_v14, %v87_v15 }
  0x81   :  { %v49_v17 = vpop.permute.xlu0 %48 }
  0x82   :  { %v88_v18 = vmul.f32 %v3829_v12, %v49_v17  ;;  %v110_v19 = vmax.f32 %v102_v16, 0.0 }
  0x84   :  { %v103_v20 = vadd.f32 %v3834_v14, %v88_v18  ;;  %3271 = vmatprep.mubr.msk.f32.mxu0 %vm129_vm1, %v110_v19  ;;  %v3946_v19 = vld [vmem:[%s4607_s4 + $0x38] sm:$0xff] }
  0x86   :  { %v111_v21 = vmax.f32 %v103_v20, 0.0 }
  0x88   :  { %3272 = vmatmul.mubr.msk.f32.vlgmr.msra.gmra.mxu0 %vm129_vm1, %v111_v21  ;;  %v3971_v21 = vld [vmem:[%s4607_s4 + $0x20] sm:$0xff] }
  0x89   :  { %3306 = vmatpush3.msra.mxu0 %v3789_v6 }
  0x8a   :  { %3307 = vmatprep.subr.mxu0 %v3719_v4 }
  0x8b   :  { %3308 = vmatpush3.msra.mxu0 %v3798_v8 }
  0x8c   :  { %3309 = vmatprep.subr.mxu0 %v3719_v4 }
  0x8d   :  { %3310 = vmatpush3.msra.mxu0 %v3807_v10 }
  0x8e   :  { %3311 = vmatprep.subr.mxu0 %v3719_v4 }
  0x8f   :  { %3312 = vmatpush3.msra.mxu0 %v3814_v11 }
  0x90   :  { %3327 = vmatprep.subr.mxu0 %v3719_v4 }
  0xcc   :  { %v360_v22 = vpop.f32.mrf.mxu1 }
  0xce   :  { %v3293_v23 = vpop.f32.mrf.mxu1 }
 0x148   :  { %v3850_v24 = vpop.f32.mrf.mxu0 }
 0x14a   :  { %v220_v26 = vpop.f32.mrf.mxu0 }
 0x14b   :  { %v221_v27 = vadd.f32 %v3855_v25, %v220_v26 }
 0x14d   :  { %v364_v28 = vadd.f32 %v360_v22, %v221_v27 }
 0x14f   :  { %3642 = vtanh.f32 %v364_v28 }
 0x15c   :  { %v3643_v30 = vpop.eup %3642 }
 0x15d   :  { %v366_v32 = vmul.f32 %v3643_v30, %v3861_v29 }
 0x15f   :  { %v367_v33 = vadd.f32 %v3866_v31, %v366_v32  ;;  %v226_v32 = vadd.f32 %v3850_v24, %v3855_v25 }
 0x161   :  { %370 = vrot.lane.b32.xlu1 %v367_v33, %s3721_s16  ;;  %v368_v39 = vmul.f32 0.0, %v367_v33 }
 0x1d3   :  { %v371_v34 = vpop.permute.xlu1 %370 }
 0x1d4   :  { %v373_v35 = vmul.f32 %v371_v34, %v367_v33 }
 0x1d6   :  { %375 = vrot.lane.b32.xlu1 %v373_v35, %s3722_s17 }
 0x1da   :  { %53 = vperm.xlu1 %3641, %v34_v36  }
 0x1de   :  { %63 = vperm.xlu1 %3641, %v36_v37  }
 0x1e2   :  { %73 = vperm.xlu1 %3641, %v38_v38   ;;  %v4013_v38 = vld [vmem:[%s4610_s5 + $0x1] ss:$0 sm:$0xff] }
 0x248   :  { %v376_v40 = vpop.permute.xlu1 %375 }
 0x249   :  { %v3881_v41 = vadd.f32 %v376_v40, %v368_v39 }
 0x24b   :  { %3644 = vtanh.f32 %v3881_v41 }
 0x255   :  { %v54_v42 = vpop.permute.xlu1 %53 }
 0x256   :  { %v89_v43 = vmul.f32 %v3829_v12, %v54_v42 }
 0x258   :  { %v3645_v44 = vpop.eup %3644  ;;  %v104_v45 = vadd.f32 %v3834_v14, %v89_v43 }
 0x259   :  { %381 = vrot.lane.b32.xlu0 %v3645_v44, %s3721_s16  ;;  %v64_v56 = vpop.permute.xlu1 %63 }
 0x25a   :  { %v112_v47 = vmax.f32 %v104_v45, 0.0  ;;  %v91_v57 = vmul.f32 %v3829_v12, %v64_v56 }
 0x25c   :  { %3274 = vmatprep.mubr.msk.f32.mxu0 %vm129_vm1, %v112_v47  ;;  %v106_v60 = vadd.f32 %v3834_v14, %v91_v57 }
 0x25d   :  { %58 = vperm.xlu0 %3640, %v35_v46   ;;  %v74_v58 = vpop.permute.xlu1 %73 }
 0x25e   :  { %v93_v61 = vmul.f32 %v3829_v12, %v74_v58  ;;  %v114_v0 = vmax.f32 %v106_v60, 0.0 }
 0x260   :  { %v108_v2 = vadd.f32 %v3834_v14, %v93_v61 }
 0x261   :  { %68 = vperm.xlu0 %3640, %v37_v48  }
 0x262   :  { %v116_v9 = vmax.f32 %v108_v2, 0.0 }
 0x265   :  { %78 = vperm.xlu0 %3640, %v39_v49  }
 0x2cb   :  { %v382_v54 = vpop.permute.xlu0 %381 }
 0x2cc   :  { %v384_v55 = vmul.f32 %v382_v54, %v367_v33 }
 0x2ce   :  { %386 = vrot.lane.b32.xlu1 %v384_v55, %s3722_s17 }
 0x2d8   :  { %v59_v59 = vpop.permute.xlu0 %58 }
 0x2d9   :  { %v90_v62 = vmul.f32 %v3829_v12, %v59_v59 }
 0x2db   :  { %v105_v63 = vadd.f32 %v3834_v14, %v90_v62 }
 0x2dc   :  { %v69_v1 = vpop.permute.xlu0 %68 }
 0x2dd   :  { %v113_v3 = vmax.f32 %v105_v63, 0.0  ;;  %v92_v5 = vmul.f32 %v3829_v12, %v69_v1 }
 0x2df   :  { %v107_v7 = vadd.f32 %v3834_v14, %v92_v5  ;;  %3275 = vmatmul.mubr.msk.f32.gmra.mxu0 %vm129_vm1, %v113_v3 }
 0x2e0   :  { %v79_v13 = vpop.permute.xlu0 %78  ;;  %3277 = vmatprep.mubr.msk.f32.mxu0 %vm129_vm1, %v114_v0 }
 0x2e1   :  { %v115_v15 = vmax.f32 %v107_v7, 0.0  ;;  %v94_v16 = vmul.f32 %v3829_v12, %v79_v13  ;;  %v3953_v12 = vld [vmem:[%s4607_s4 + $0x30] sm:$0xff] }
 0x2e3   :  { %v109_v17 = vadd.f32 %v3834_v14, %v94_v16  ;;  %3278 = vmatmul.mubr.msk.f32.gmra.mxu0 %vm129_vm1, %v115_v15  ;;  %v3962_v14 = vld [vmem:[%s4607_s4 + $0x28] sm:$0xff] }
 0x2e4   :  { %3280 = vmatprep.mubr.msk.f32.mxu0 %vm129_vm1, %v116_v9 }
 0x2e5   :  { %v117_v18 = vmax.f32 %v109_v17, 0.0 }
 0x2e7   :  { %3281 = vmatmul.mubr.msk.f32.gmra.mxu0 %vm129_vm1, %v117_v18 }
 0x2e8   :  { %3313 = vmatprep.mubr.msk.f32.mxu0 %vm3720_vm0, %v3719_v4 }
 0x340   :  { %v387_v20 = vpop.permute.xlu1 %386 }
 0x341   :  { %3303 = vmatmul.mubr.msk.f32.vlgmr.msra.gmra.mxu1 %vm129_vm1, %v387_v20  ;;  %3314 = vmatmul.mubr.msk.f32.vlgmr.msra.gmra.mxu0 %vm129_vm1, %v387_v20 }
 0x342   :  { %3328 = vmatpush3.msra.mxu0 %v3946_v19  ;;  %3335 = vmatprep.mubr.msk.f32.mxu0 %vm3720_vm0, %v3719_v4 }
 0x343   :  { %3329 = vmatprep.subr.mxu0 %v3719_v4  ;;  %3317 = vmatpush3.msra.mxu1 %v3900_v50 }
 0x344   :  { %3330 = vmatpush3.msra.mxu0 %v3953_v12  ;;  %3318 = vmatprep.subr.mxu1 %v3719_v4 }
 0x345   :  { %3331 = vmatprep.subr.mxu0 %v3719_v4  ;;  %3319 = vmatpush3.msra.mxu1 %v3905_v51 }
 0x346   :  { %3332 = vmatpush3.msra.mxu0 %v3962_v14  ;;  %3320 = vmatprep.subr.mxu1 %v3719_v4 }
 0x347   :  { %3333 = vmatprep.subr.mxu0 %v3719_v4  ;;  %3321 = vmatpush3.msra.mxu1 %v3912_v52 }
 0x348   :  { %3334 = vmatpush3.msra.mxu0 %v3971_v21  ;;  %3322 = vmatprep.subr.mxu1 %v3719_v4 }
 0x349   :  { %3336 = vmatmul.mubr.f32.vlgmr.msra.gmra.mxu0 %v3719_v4  ;;  %3323 = vmatpush3.msra.mxu1 %v3919_v53 }
 0x34a   :  { %3324 = vmatprep.mubr.msk.f32.mxu1 %vm3720_vm0, %v3719_v4  ;;  %3338 = vmatprep.subr.mxu1 %v3719_v4 }
 0x34b   :  { %3349 = vmatprep.subr.mxu0 %v3719_v4  ;;  %3357 = vmatprep.mubr.msk.f32.mxu0 %vm3720_vm0, %v3719_v4 }
 0x34c   :  { %3350 = vmatpush3.msra.mxu0 %v3900_v50 }
 0x34d   :  { %3351 = vmatprep.subr.mxu0 %v3719_v4 }
 0x34e   :  { %3352 = vmatpush3.msra.mxu0 %v3905_v51 }
 0x34f   :  { %3353 = vmatprep.subr.mxu0 %v3719_v4 }
 0x350   :  { %3354 = vmatpush3.msra.mxu0 %v3912_v52 }
 0x351   :  { %3355 = vmatprep.subr.mxu0 %v3719_v4 }
 0x352   :  { %3356 = vmatpush3.msra.mxu0 %v3919_v53 }
 0x353   :  { %3371 = vmatprep.subr.mxu0 %v3719_v4 }
 0x39f   :  { %v3996_v22 = vpop.f32.mrf.mxu0 }
 0x3a1   :  { %v3998_v23 = vpop.f32.mrf.mxu0 }
 0x3a2   :  { %v231_v15 = vadd.f32 %v3855_v25, %v3998_v23 }
 0x3a3   :  { %v4000_v26 = vpop.f32.mrf.mxu0 }
 0x3a5   :  { %v4002_v27 = vpop.f32.mrf.mxu0 }
 0x3a7   :  { %v4004_v28 = vpop.f32.mrf.mxu0 }
 0x3a9   :  { %v4006_v30 = vpop.f32.mrf.mxu0 }
 0x401   :  { %v456_v33 = vpop.f32.mrf.mxu1  ;;  %v526_v34 = vpop.f32.mrf.mxu0 }
 0x402   :  { %v530_v35 = vadd.f32 %v526_v34, %v226_v32  ;;  %v457_v39 = vadd.f32 %v4013_v38, %v456_v33 }
 0x403   :  { %v3304_v36 = vpop.f32.mrf.mxu1  ;;  %v3315_v37 = vpop.f32.mrf.mxu0 }
 0x404   :  { %3646 = vtanh.f32 %v530_v35 }
 0x409   :  { %v692_v40 = vpop.f32.mrf.mxu0 }
 0x40a   :  { %v696_v42 = vadd.f32 %v692_v40, %v457_v39 }
 0x40b   :  { %v3337_v43 = vpop.f32.mrf.mxu0 }
 0x40c   :  { %3648 = vtanh.f32 %v696_v42 }
 0x411   :  { %v3647_v44 = vpop.eup %3646 }
 0x412   :  { %v532_v24 = vmul.f32 %v3647_v44, %v3861_v29 }
 0x414   :  { %v533_v45 = vadd.f32 %v3866_v31, %v532_v24 }
 0x416   :  { %536 = vrot.lane.b32.xlu0 %v533_v45, %s3721_s16  ;;  %v534_v57 = vmul.f32 %v533_v45, %v3881_v41 }
 0x419   :  { %v3649_v46 = vpop.eup %3648 }
 0x41a   :  { %v698_v47 = vmul.f32 %v3649_v46, %v3861_v29 }
 0x41c   :  { %v699_v48 = vadd.f32 %v3866_v31, %v698_v47 }
 0x41e   :  { %702 = vrot.lane.b32.xlu1 %v699_v48, %s3721_s16  ;;  %v700_v60 = vmul.f32 0.0, %v699_v48 }
 0x488   :  { %v537_v49 = vpop.permute.xlu0 %536 }
 0x489   :  { %v539_v54 = vmul.f32 %v537_v49, %v533_v45 }
 0x48b   :  { %541 = vrot.lane.b32.xlu0 %v539_v54, %s3722_s17 }
 0x490   :  { %v703_v55 = vpop.permute.xlu1 %702 }
 0x491   :  { %v705_v56 = vmul.f32 %v703_v55, %v699_v48 }
 0x493   :  { %707 = vrot.lane.b32.xlu1 %v705_v56, %s3722_s17 }
 0x4fd   :  { %v542_v58 = vpop.permute.xlu0 %541 }
 0x4fe   :  { %v4025_v59 = vadd.f32 %v542_v58, %v534_v57 }
 0x500   :  { %3650 = vtanh.f32 %v4025_v59 }
 0x505   :  { %v708_v61 = vpop.permute.xlu1 %707 }
 0x506   :  { %v4028_v62 = vadd.f32 %v708_v61, %v700_v60 }
 0x508   :  { %3652 = vtanh.f32 %v4028_v62 }
 0x50d   :  { %v3651_v63 = vpop.eup %3650 }
 0x50e   :  { %547 = vrot.lane.b32.xlu0 %v3651_v63, %s3721_s16 }
 0x515   :  { %v3653_v0 = vpop.eup %3652 }
 0x516   :  { %713 = vrot.lane.b32.xlu1 %v3653_v0, %s3721_s16 }
 0x580   :  { %v548_v1 = vpop.permute.xlu0 %547 }
 0x581   :  { %v550_v2 = vmul.f32 %v548_v1, %v533_v45  ;;  %v236_v1 = vadd.f32 %v3996_v22, %v3855_v25 }
 0x583   :  { %552 = vrot.lane.b32.xlu0 %v550_v2, %s3722_s17 }
 0x588   :  { %v714_v41 = vpop.permute.xlu1 %713 }
 0x589   :  { %v716_v3 = vmul.f32 %v714_v41, %v699_v48 }
 0x58b   :  { %884 = vrot.lane.b32.xlu1 %v716_v3, %s3722_s17 }
 0x5f5   :  { %v553_v5 = vpop.permute.xlu0 %552 }
 0x5f6   :  { %3325 = vmatmul.mubr.msk.f32.vlgmr.msra.gmra.mxu1 %vm129_vm1, %v553_v5 }
 0x5f7   :  { %3339 = vmatpush3.msra.mxu1 %v3789_v6  ;;  %3346 = vmatprep.mubr.msk.f32.mxu1 %vm3720_vm0, %v3719_v4 }
 0x5f8   :  { %3340 = vmatprep.subr.mxu1 %v3719_v4 }
 0x5f9   :  { %3341 = vmatpush3.msra.mxu1 %v3798_v8 }
 0x5fa   :  { %3342 = vmatprep.subr.mxu1 %v3719_v4 }
 0x5fb   :  { %3343 = vmatpush3.msra.mxu1 %v3807_v10 }
 0x5fc   :  { %3344 = vmatprep.subr.mxu1 %v3719_v4 }
 0x5fd   :  { %3345 = vmatpush3.msra.mxu1 %v3814_v11  ;;  %v4055_v7 = vpop.permute.xlu1 %884 }
 0x5fe   :  { %3347 = vmatmul.mubr.msk.f32.vlgmr.msra.gmra.mxu1 %vm129_vm1, %v553_v5  ;;  %3360 = vmatprep.subr.mxu1 %v3719_v4 }
 0x5ff   :  { %3361 = vmatpush3.msra.mxu1 %v3946_v19  ;;  %3368 = vmatprep.mubr.msk.f32.mxu1 %vm3720_vm0, %v3719_v4 }
 0x600   :  { %3362 = vmatprep.subr.mxu1 %v3719_v4 }
 0x601   :  { %3363 = vmatpush3.msra.mxu1 %v3953_v12 }
 0x602   :  { %3364 = vmatprep.subr.mxu1 %v3719_v4 }
 0x603   :  { %3365 = vmatpush3.msra.mxu1 %v3962_v14 }
 0x604   :  { %3366 = vmatprep.subr.mxu1 %v3719_v4 }
 0x605   :  { %3367 = vmatpush3.msra.mxu1 %v3971_v21 }
 0x606   :  { %3369 = vmatmul.mubr.msk.f32.vlgmr.msra.gmra.mxu1 %vm129_vm1, %v4055_v7  ;;  %3382 = vmatprep.subr.mxu1 %v3719_v4 }
 0x607   :  { %3383 = vmatpush3.msra.mxu1 %v3900_v50  ;;  %3390 = vmatprep.mubr.msk.f32.mxu1 %vm3720_vm0, %v3719_v4 }
 0x608   :  { %3384 = vmatprep.subr.mxu1 %v3719_v4 }
 0x609   :  { %3385 = vmatpush3.msra.mxu1 %v3905_v51 }
 0x60a   :  { %3386 = vmatprep.subr.mxu1 %v3719_v4 }
 0x60b   :  { %3387 = vmatpush3.msra.mxu1 %v3912_v52 }
 0x60c   :  { %3388 = vmatprep.subr.mxu1 %v3719_v4 }
 0x60d   :  { %3389 = vmatpush3.msra.mxu1 %v3919_v53 }
 0x60e   :  { %3404 = vmatprep.subr.mxu1 %v3719_v4 }
 0x6b6   :  { %v622_v9 = vpop.f32.mrf.mxu1 }
 0x6b7   :  { %v623_v20 = vadd.f32 %v4013_v38, %v622_v9 }
 0x6b8   :  { %v3326_v13 = vpop.f32.mrf.mxu1 }
 0x6be   :  { %v783_v16 = vpop.f32.mrf.mxu1 }
 0x6bf   :  { %v787_v17 = vadd.f32 %v783_v16, %v231_v15 }
 0x6c0   :  { %v3348_v18 = vpop.f32.mrf.mxu1 }
 0x6c1   :  { %3654 = vtanh.f32 %v787_v17 }
 0x6c6   :  { %v954_v32 = vpop.f32.mrf.mxu1 }
 0x6c7   :  { %v958_v33 = vadd.f32 %v954_v32, %v623_v20 }
 0x6c8   :  { %v3370_v34 = vpop.f32.mrf.mxu1 }
 0x6c9   :  { %3656 = vtanh.f32 %v958_v33 }
 0x6ce   :  { %v3655_v35 = vpop.eup %3654 }
 0x6cf   :  { %v789_v36 = vmul.f32 %v3655_v35, %v3861_v29 }
 0x6d1   :  { %v790_v37 = vadd.f32 %v3866_v31, %v789_v36 }
 0x6d3   :  { %793 = vrot.lane.b32.xlu0 %v790_v37, %s3721_s16  ;;  %v791_v45 = vmul.f32 %v790_v37, %v4025_v59 }
 0x6d6   :  { %v3657_v39 = vpop.eup %3656 }
 0x6d7   :  { %v960_v23 = vmul.f32 %v3657_v39, %v3861_v29 }
 0x6d9   :  { %v961_v40 = vadd.f32 %v3866_v31, %v960_v23 }
 0x6db   :  { %964 = vrot.lane.b32.xlu1 %v961_v40, %s3721_s16  ;;  %v962_v48 = vmul.f32 %v961_v40, %v4028_v62 }
 0x745   :  { %v794_v42 = vpop.permute.xlu0 %793 }
 0x746   :  { %v796_v43 = vmul.f32 %v794_v42, %v790_v37 }
 0x748   :  { %798 = vrot.lane.b32.xlu0 %v796_v43, %s3722_s17 }
 0x74d   :  { %v965_v44 = vpop.permute.xlu1 %964 }
 0x74e   :  { %v967_v24 = vmul.f32 %v965_v44, %v961_v40 }
 0x750   :  { %969 = vrot.lane.b32.xlu1 %v967_v24, %s3722_s17 }
 0x7ba   :  { %v799_v46 = vpop.permute.xlu0 %798 }
 0x7bb   :  { %v4083_v47 = vadd.f32 %v799_v46, %v791_v45 }
 0x7bd   :  { %3658 = vtanh.f32 %v4083_v47 }
 0x7c2   :  { %v970_v49 = vpop.permute.xlu1 %969 }
 0x7c3   :  { %v4087_v54 = vadd.f32 %v970_v49, %v962_v48 }
 0x7c5   :  { %3660 = vtanh.f32 %v4087_v54 }
 0x7ca   :  { %v3659_v55 = vpop.eup %3658 }
 0x7cb   :  { %804 = vrot.lane.b32.xlu0 %v3659_v55, %s3721_s16 }
 0x7d2   :  { %v3661_v56 = vpop.eup %3660 }
 0x7d3   :  { %975 = vrot.lane.b32.xlu1 %v3661_v56, %s3721_s16 }
 0x83d   :  { %v805_v57 = vpop.permute.xlu0 %804 }
 0x83e   :  { %v807_v58 = vmul.f32 %v805_v57, %v790_v37  ;;  %v241_v57 = vadd.f32 %v3855_v25, %v4002_v27 }
 0x840   :  { %809 = vrot.lane.b32.xlu0 %v807_v58, %s3722_s17 }
 0x845   :  { %v976_v59 = vpop.permute.xlu1 %975 }
 0x846   :  { %v978_v60 = vmul.f32 %v976_v59, %v961_v40 }
 0x848   :  { %1146 = vrot.lane.b32.xlu1 %v978_v60, %s3722_s17 }
 0x8b2   :  { %v810_v61 = vpop.permute.xlu0 %809 }
 0x8b3   :  { %3358 = vmatmul.mubr.msk.f32.vlgmr.msra.gmra.mxu0 %vm129_vm1, %v810_v61 }
 0x8b4   :  { %3372 = vmatpush3.msra.mxu0 %v3789_v6  ;;  %3379 = vmatprep.mubr.msk.f32.mxu0 %vm3720_vm0, %v3719_v4 }
 0x8b5   :  { %3373 = vmatprep.subr.mxu0 %v3719_v4 }
 0x8b6   :  { %3374 = vmatpush3.msra.mxu0 %v3798_v8 }
 0x8b7   :  { %3375 = vmatprep.subr.mxu0 %v3719_v4 }
 0x8b8   :  { %3376 = vmatpush3.msra.mxu0 %v3807_v10 }
 0x8b9   :  { %3377 = vmatprep.subr.mxu0 %v3719_v4 }
 0x8ba   :  { %3378 = vmatpush3.msra.mxu0 %v3814_v11  ;;  %v4114_v62 = vpop.permute.xlu1 %1146 }
 0x8bb   :  { %3380 = vmatmul.mubr.msk.f32.vlgmr.msra.gmra.mxu0 %vm129_vm1, %v810_v61  ;;  %3393 = vmatprep.subr.mxu0 %v3719_v4 }
 0x8bc   :  { %3394 = vmatpush3.msra.mxu0 %v3946_v19  ;;  %3401 = vmatprep.mubr.msk.f32.mxu0 %vm3720_vm0, %v3719_v4 }
 0x8bd   :  { %3395 = vmatprep.subr.mxu0 %v3719_v4 }
 0x8be   :  { %3396 = vmatpush3.msra.mxu0 %v3953_v12 }
 0x8bf   :  { %3397 = vmatprep.subr.mxu0 %v3719_v4 }
 0x8c0   :  { %3398 = vmatpush3.msra.mxu0 %v3962_v14 }
 0x8c1   :  { %3399 = vmatprep.subr.mxu0 %v3719_v4 }
 0x8c2   :  { %3400 = vmatpush3.msra.mxu0 %v3971_v21 }
 0x8c3   :  { %3402 = vmatmul.mubr.msk.f32.vlgmr.msra.gmra.mxu0 %vm129_vm1, %v4114_v62  ;;  %3415 = vmatprep.subr.mxu0 %v3719_v4 }
 0x8c4   :  { %3416 = vmatpush3.msra.mxu0 %v3900_v50  ;;  %3423 = vmatprep.mubr.msk.f32.mxu0 %vm3720_vm0, %v3719_v4 }
 0x8c5   :  { %3417 = vmatprep.subr.mxu0 %v3719_v4 }
 0x8c6   :  { %3418 = vmatpush3.msra.mxu0 %v3905_v51 }
 0x8c7   :  { %3419 = vmatprep.subr.mxu0 %v3719_v4 }
 0x8c8   :  { %3420 = vmatpush3.msra.mxu0 %v3912_v52 }
 0x8c9   :  { %3421 = vmatprep.subr.mxu0 %v3719_v4 }
 0x8ca   :  { %3422 = vmatpush3.msra.mxu0 %v3919_v53 }
 0x8cb   :  { %3437 = vmatprep.subr.mxu0 %v3719_v4 }
 0x973   :  { %v879_v63 = vpop.f32.mrf.mxu0 }
 0x974   :  { %v880_v5 = vadd.f32 %v4013_v38, %v879_v63 }
 0x975   :  { %v3359_v0 = vpop.f32.mrf.mxu0 }
 0x97b   :  { %v1045_v2 = vpop.f32.mrf.mxu0 }
 0x97c   :  { %v1049_v41 = vadd.f32 %v1045_v2, %v236_v1 }
 0x97d   :  { %v3381_v3 = vpop.f32.mrf.mxu0 }
 0x97e   :  { %3662 = vtanh.f32 %v1049_v41 }
 0x983   :  { %v1216_v9 = vpop.f32.mrf.mxu0 }
 0x984   :  { %v1220_v13 = vadd.f32 %v1216_v9, %v880_v5 }
 0x985   :  { %v3403_v15 = vpop.f32.mrf.mxu0 }
 0x986   :  { %3664 = vtanh.f32 %v1220_v13 }
 0x98b   :  { %v3663_v16 = vpop.eup %3662 }
 0x98c   :  { %v1051_v17 = vmul.f32 %v3663_v16, %v3861_v29 }
 0x98e   :  { %v1052_v18 = vadd.f32 %v3866_v31, %v1051_v17 }
 0x990   :  { %1055 = vrot.lane.b32.xlu0 %v1052_v18, %s3721_s16  ;;  %v1053_v37 = vmul.f32 %v1052_v18, %v4083_v47 }
 0x993   :  { %v3665_v20 = vpop.eup %3664 }
 0x994   :  { %v1222_v22 = vmul.f32 %v3665_v20, %v3861_v29 }
 0x996   :  { %v1223_v32 = vadd.f32 %v3866_v31, %v1222_v22 }
 0x998   :  { %1226 = vrot.lane.b32.xlu1 %v1223_v32, %s3721_s16  ;;  %v1224_v40 = vmul.f32 %v1223_v32, %v4087_v54 }
 0xa02   :  { %v1056_v33 = vpop.permute.xlu0 %1055 }
 0xa03   :  { %v1058_v34 = vmul.f32 %v1056_v33, %v1052_v18 }
 0xa05   :  { %1060 = vrot.lane.b32.xlu0 %v1058_v34, %s3722_s17 }
 0xa0a   :  { %v1227_v35 = vpop.permute.xlu1 %1226 }
 0xa0b   :  { %v1229_v36 = vmul.f32 %v1227_v35, %v1223_v32 }
 0xa0d   :  { %1231 = vrot.lane.b32.xlu1 %v1229_v36, %s3722_s17 }
 0xa77   :  { %v1061_v39 = vpop.permute.xlu0 %1060 }
 0xa78   :  { %v4142_v23 = vadd.f32 %v1061_v39, %v1053_v37 }
 0xa7a   :  { %3666 = vtanh.f32 %v4142_v23 }
 0xa7f   :  { %v1232_v42 = vpop.permute.xlu1 %1231 }
 0xa80   :  { %v4146_v43 = vadd.f32 %v1232_v42, %v1224_v40 }
 0xa82   :  { %3668 = vtanh.f32 %v4146_v43 }
 0xa87   :  { %v3667_v44 = vpop.eup %3666 }
 0xa88   :  { %1066 = vrot.lane.b32.xlu0 %v3667_v44, %s3721_s16 }
 0xa8f   :  { %v3669_v24 = vpop.eup %3668 }
 0xa90   :  { %1237 = vrot.lane.b32.xlu1 %v3669_v24, %s3721_s16 }
 0xafa   :  { %v1067_v45 = vpop.permute.xlu0 %1066 }
 0xafb   :  { %v1069_v46 = vmul.f32 %v1067_v45, %v1052_v18 }
 0xafd   :  { %1071 = vrot.lane.b32.xlu0 %v1069_v46, %s3722_s17 }
 0xb02   :  { %v1238_v47 = vpop.permute.xlu1 %1237 }
 0xb03   :  { %v1240_v48 = vmul.f32 %v1238_v47, %v1223_v32 }
 0xb05   :  { %1408 = vrot.lane.b32.xlu1 %v1240_v48, %s3722_s17 }
 0xb6f   :  { %v1072_v49 = vpop.permute.xlu0 %1071 }
 0xb70   :  { %3391 = vmatmul.mubr.msk.f32.vlgmr.msra.gmra.mxu1 %vm129_vm1, %v1072_v49 }
 0xb71   :  { %3405 = vmatpush3.msra.mxu1 %v3789_v6  ;;  %3412 = vmatprep.mubr.msk.f32.mxu1 %vm3720_vm0, %v3719_v4 }
 0xb72   :  { %3406 = vmatprep.subr.mxu1 %v3719_v4 }
 0xb73   :  { %3407 = vmatpush3.msra.mxu1 %v3798_v8 }
 0xb74   :  { %3408 = vmatprep.subr.mxu1 %v3719_v4 }
 0xb75   :  { %3409 = vmatpush3.msra.mxu1 %v3807_v10 }
 0xb76   :  { %3410 = vmatprep.subr.mxu1 %v3719_v4 }
 0xb77   :  { %3411 = vmatpush3.msra.mxu1 %v3814_v11  ;;  %v4173_v54 = vpop.permute.xlu1 %1408 }
 0xb78   :  { %3413 = vmatmul.mubr.msk.f32.vlgmr.msra.gmra.mxu1 %vm129_vm1, %v1072_v49  ;;  %3426 = vmatprep.subr.mxu1 %v3719_v4 }
 0xb79   :  { %3427 = vmatpush3.msra.mxu1 %v3946_v19  ;;  %3434 = vmatprep.mubr.msk.f32.mxu1 %vm3720_vm0, %v3719_v4 }
 0xb7a   :  { %3428 = vmatprep.subr.mxu1 %v3719_v4 }
 0xb7b   :  { %3429 = vmatpush3.msra.mxu1 %v3953_v12 }
 0xb7c   :  { %3430 = vmatprep.subr.mxu1 %v3719_v4 }
 0xb7d   :  { %3431 = vmatpush3.msra.mxu1 %v3962_v14 }
 0xb7e   :  { %3432 = vmatprep.subr.mxu1 %v3719_v4 }
 0xb7f   :  { %3433 = vmatpush3.msra.mxu1 %v3971_v21 }
 0xb80   :  { %3435 = vmatmul.mubr.msk.f32.vlgmr.msra.gmra.mxu1 %vm129_vm1, %v4173_v54  ;;  %3448 = vmatprep.subr.mxu1 %v3719_v4 }
 0xb81   :  { %3449 = vmatpush3.msra.mxu1 %v3900_v50  ;;  %3456 = vmatprep.mubr.msk.f32.mxu1 %vm3720_vm0, %v3719_v4 }
 0xb82   :  { %3450 = vmatprep.subr.mxu1 %v3719_v4 }
 0xb83   :  { %3451 = vmatpush3.msra.mxu1 %v3905_v51 }
 0xb84   :  { %3452 = vmatprep.subr.mxu1 %v3719_v4 }
 0xb85   :  { %3453 = vmatpush3.msra.mxu1 %v3912_v52 }
 0xb86   :  { %3454 = vmatprep.subr.mxu1 %v3719_v4 }
 0xb87   :  { %3455 = vmatpush3.msra.mxu1 %v3919_v53 }
 0xb88   :  { %3470 = vmatprep.subr.mxu1 %v3719_v4 }
 0xc30   :  { %v1141_v55 = vpop.f32.mrf.mxu1 }
 0xc31   :  { %v1142_v61 = vadd.f32 %v4013_v38, %v1141_v55 }
 0xc32   :  { %v3392_v56 = vpop.f32.mrf.mxu1 }
 0xc38   :  { %v1307_v58 = vpop.f32.mrf.mxu1 }
 0xc39   :  { %v1311_v59 = vadd.f32 %v1307_v58, %v241_v57 }
 0xc3a   :  { %v3414_v60 = vpop.f32.mrf.mxu1 }
 0xc3b   :  { %3670 = vtanh.f32 %v1311_v59 }
 0xc40   :  { %v1478_v63 = vpop.f32.mrf.mxu1 }
 0xc41   :  { %v1482_v0 = vadd.f32 %v1478_v63, %v1142_v61 }
 0xc42   :  { %v3436_v1 = vpop.f32.mrf.mxu1 }
 0xc43   :  { %3672 = vtanh.f32 %v1482_v0 }
 0xc48   :  { %v3671_v2 = vpop.eup %3670 }
 0xc49   :  { %v1313_v41 = vmul.f32 %v3671_v2, %v3861_v29 }
 0xc4b   :  { %v1314_v3 = vadd.f32 %v3866_v31, %v1313_v41 }
 0xc4d   :  { %1317 = vrot.lane.b32.xlu0 %v1314_v3, %s3721_s16  ;;  %v1315_v18 = vmul.f32 %v1314_v3, %v4142_v23 }
 0xc50   :  { %v3673_v5 = vpop.eup %3672 }
 0xc51   :  { %v1484_v27 = vmul.f32 %v3673_v5, %v3861_v29 }
 0xc53   :  { %v1485_v9 = vadd.f32 %v3866_v31, %v1484_v27 }
 0xc55   :  { %1488 = vrot.lane.b32.xlu1 %v1485_v9, %s3721_s16  ;;  %v1486_v32 = vmul.f32 %v1485_v9, %v4146_v43 }
 0xcbf   :  { %v1318_v13 = vpop.permute.xlu0 %1317 }
 0xcc0   :  { %v1320_v15 = vmul.f32 %v1318_v13, %v1314_v3 }
 0xcc2   :  { %1322 = vrot.lane.b32.xlu0 %v1320_v15, %s3722_s17 }
 0xcc7   :  { %v1489_v16 = vpop.permute.xlu1 %1488 }
 0xcc8   :  { %v1491_v17 = vmul.f32 %v1489_v16, %v1485_v9 }
 0xcca   :  { %1493 = vrot.lane.b32.xlu1 %v1491_v17, %s3722_s17 }
 0xd34   :  { %v1323_v20 = vpop.permute.xlu0 %1322 }
 0xd35   :  { %v4201_v22 = vadd.f32 %v1323_v20, %v1315_v18  ;;  %v4275_v20 = vld [vmem:[%s4607_s4 + $0x18] sm:$0xff] }
 0xd37   :  { %3674 = vtanh.f32 %v4201_v22 }
 0xd3c   :  { %v1494_v33 = vpop.permute.xlu1 %1493 }
 0xd3d   :  { %v4205_v34 = vadd.f32 %v1494_v33, %v1486_v32  ;;  %v4291_v32 = vld [vmem:[%s4607_s4 + $0x8] sm:$0xff]  ;;  %v4298_v33 = vld [vmem:[%s4607_s4] sm:$0xff] }
 0xd3f   :  { %3676 = vtanh.f32 %v4205_v34 }
 0xd44   :  { %v3675_v35 = vpop.eup %3674 }
 0xd45   :  { %1328 = vrot.lane.b32.xlu0 %v3675_v35, %s3721_s16 }
 0xd4c   :  { %v3677_v36 = vpop.eup %3676 }
 0xd4d   :  { %1499 = vrot.lane.b32.xlu1 %v3677_v36, %s3721_s16 }
 0xdb7   :  { %v1329_v37 = vpop.permute.xlu0 %1328 }
 0xdb8   :  { %v1331_v39 = vmul.f32 %v1329_v37, %v1314_v3 }
 0xdba   :  { %1333 = vrot.lane.b32.xlu0 %v1331_v39, %s3722_s17 }
 0xdbf   :  { %v1500_v23 = vpop.permute.xlu1 %1499 }
 0xdc0   :  { %v1502_v40 = vmul.f32 %v1500_v23, %v1485_v9 }
 0xdc2   :  { %1670 = vrot.lane.b32.xlu1 %v1502_v40, %s3722_s17 }
 0xe2c   :  { %v1334_v42 = vpop.permute.xlu0 %1333 }
 0xe2d   :  { %3424 = vmatmul.mubr.msk.f32.vlgmr.msra.gmra.mxu0 %vm129_vm1, %v1334_v42 }
 0xe2e   :  { %3438 = vmatpush3.msra.mxu0 %v3789_v6  ;;  %3445 = vmatprep.mubr.msk.f32.mxu0 %vm3720_vm0, %v3719_v4 }
 0xe2f   :  { %3439 = vmatprep.subr.mxu0 %v3719_v4 }
 0xe30   :  { %3440 = vmatpush3.msra.mxu0 %v3798_v8 }
 0xe31   :  { %3441 = vmatprep.subr.mxu0 %v3719_v4 }
 0xe32   :  { %3442 = vmatpush3.msra.mxu0 %v3807_v10 }
 0xe33   :  { %3443 = vmatprep.subr.mxu0 %v3719_v4 }
 0xe34   :  { %3444 = vmatpush3.msra.mxu0 %v3814_v11  ;;  %v4232_v6 = vpop.permute.xlu1 %1670  ;;  %v246_v11 = vadd.f32 %v4000_v26, %v3855_v25 }
 0xe35   :  { %3446 = vmatmul.mubr.msk.f32.vlgmr.msra.gmra.mxu0 %vm129_vm1, %v1334_v42  ;;  %3459 = vmatprep.subr.mxu0 %v3719_v4 }
 0xe36   :  { %3460 = vmatpush3.msra.mxu0 %v3946_v19  ;;  %3467 = vmatprep.mubr.msk.f32.mxu0 %vm3720_vm0, %v3719_v4 }
 0xe37   :  { %3461 = vmatprep.subr.mxu0 %v3719_v4 }
 0xe38   :  { %3462 = vmatpush3.msra.mxu0 %v3953_v12 }
 0xe39   :  { %3463 = vmatprep.subr.mxu0 %v3719_v4 }
 0xe3a   :  { %3464 = vmatpush3.msra.mxu0 %v3962_v14 }
 0xe3b   :  { %3465 = vmatprep.subr.mxu0 %v3719_v4 }
 0xe3c   :  { %3466 = vmatpush3.msra.mxu0 %v3971_v21 }
 0xe3d   :  { %3468 = vmatmul.mubr.msk.f32.vlgmr.msra.gmra.mxu0 %vm129_vm1, %v4232_v6  ;;  %3481 = vmatprep.subr.mxu0 %v3719_v4 }
 0xe3e   :  { %3482 = vmatpush3.msra.mxu0 %v3900_v50  ;;  %3489 = vmatprep.mubr.msk.f32.mxu0 %vm3720_vm0, %v3719_v4 }
 0xe3f   :  { %3483 = vmatprep.subr.mxu0 %v3719_v4 }
 0xe40   :  { %3484 = vmatpush3.msra.mxu0 %v3905_v51 }
 0xe41   :  { %3485 = vmatprep.subr.mxu0 %v3719_v4 }
 0xe42   :  { %3486 = vmatpush3.msra.mxu0 %v3912_v52 }
 0xe43   :  { %3487 = vmatprep.subr.mxu0 %v3719_v4 }
 0xe44   :  { %3488 = vmatpush3.msra.mxu0 %v3919_v53 }
 0xe45   :  { %3503 = vmatprep.subr.mxu0 %v3719_v4 }
 0xeed   :  { %v1403_v8 = vpop.f32.mrf.mxu0 }
 0xeee   :  { %v1404_v45 = vadd.f32 %v4013_v38, %v1403_v8 }
 0xeef   :  { %v3425_v10 = vpop.f32.mrf.mxu0 }
 0xef5   :  { %v1569_v43 = vpop.f32.mrf.mxu0 }
 0xef6   :  { %v1573_v44 = vadd.f32 %v1569_v43, %v246_v11  ;;  %v4342_v43 = vld [vmem:[%s4611_s8 + $0x1] ss:$0 sm:$0xff] }
 0xef7   :  { %v3447_v24 = vpop.f32.mrf.mxu0 }
 0xef8   :  { %3678 = vtanh.f32 %v1573_v44 }
 0xefd   :  { %v1740_v46 = vpop.f32.mrf.mxu0 }
 0xefe   :  { %v1744_v47 = vadd.f32 %v1740_v46, %v1404_v45 }
 0xeff   :  { %v3469_v48 = vpop.f32.mrf.mxu0 }
 0xf00   :  { %3680 = vtanh.f32 %v1744_v47 }
 0xf05   :  { %v3679_v49 = vpop.eup %3678 }
 0xf06   :  { %v1575_v55 = vmul.f32 %v3679_v49, %v3861_v29 }
 0xf08   :  { %v1576_v56 = vadd.f32 %v3866_v31, %v1575_v55 }
 0xf0a   :  { %1579 = vrot.lane.b32.xlu0 %v1576_v56, %s3721_s16  ;;  %v1577_v0 = vmul.f32 %v1576_v56, %v4201_v22  ;;  %v4284_v22 = vld [vmem:[%s4607_s4 + $0x10] sm:$0xff] }
 0xf0d   :  { %v3681_v57 = vpop.eup %3680 }
 0xf0e   :  { %v1746_v26 = vmul.f32 %v3681_v57, %v3861_v29 }
 0xf10   :  { %v1747_v58 = vadd.f32 %v3866_v31, %v1746_v26 }
 0xf12   :  { %1750 = vrot.lane.b32.xlu1 %v1747_v58, %s3721_s16  ;;  %v1748_v41 = vmul.f32 %v1747_v58, %v4205_v34 }
 0xf7c   :  { %v1580_v59 = vpop.permute.xlu0 %1579 }
 0xf7d   :  { %v1582_v60 = vmul.f32 %v1580_v59, %v1576_v56 }
 0xf7f   :  { %1584 = vrot.lane.b32.xlu0 %v1582_v60, %s3722_s17 }
 0xf84   :  { %v1751_v61 = vpop.permute.xlu1 %1750 }
 0xf85   :  { %v1753_v63 = vmul.f32 %v1751_v61, %v1747_v58 }
 0xf87   :  { %1755 = vrot.lane.b32.xlu1 %v1753_v63, %s3722_s17 }
 0xff1   :  { %v1585_v1 = vpop.permute.xlu0 %1584 }
 0xff2   :  { %v4260_v2 = vadd.f32 %v1585_v1, %v1577_v0  ;;  %v3057_v0 = vld [vmem:[%s4612_s6 + $0x38] sm:$0xff] }
 0xff4   :  { %3682 = vtanh.f32 %v4260_v2 }
 0xff9   :  { %v1756_v3 = vpop.permute.xlu1 %1755 }
 0xffa   :  { %v4264_v5 = vadd.f32 %v1756_v3, %v1748_v41  ;;  %v3065_v41 = vld [vmem:[%s4612_s6 + $0x68] sm:$0xff]  ;;  %v3077_v3 = vld [vmem:[%s4612_s6 + $0xb8] sm:$0xff] }
 0xffc   :  { %3684 = vtanh.f32 %v4264_v5 }
0x1001   :  { %v3683_v27 = vpop.eup %3682 }
0x1002   :  { %1590 = vrot.lane.b32.xlu0 %v3683_v27, %s3721_s16  ;;  %v3075_v27 = vld [vmem:[%s4612_s6 + $0xa8] sm:$0xff] }
0x1009   :  { %v3685_v9 = vpop.eup %3684 }
0x100a   :  { %1761 = vrot.lane.b32.xlu1 %v3685_v9, %s3721_s16 }
0x1074   :  { %v1591_v13 = vpop.permute.xlu0 %1590 }
0x1075   :  { %v1593_v15 = vmul.f32 %v1591_v13, %v1576_v56 }
0x1077   :  { %1595 = vrot.lane.b32.xlu0 %v1593_v15, %s3722_s17  ;;  %v3712_v15 = vld [vmem:[%s4610_s5] ss:$0 sm:$0xff] }
0x107c   :  { %v1762_v16 = vpop.permute.xlu1 %1761 }
0x107d   :  { %v1764_v17 = vmul.f32 %v1762_v16, %v1747_v58  ;;  %v256_v16 = vadd.f32 %v3712_v15, %v4004_v28 }
0x107f   :  { %1932 = vrot.lane.b32.xlu1 %v1764_v17, %s3722_s17 }
0x10e9   :  { %v1596_v18 = vpop.permute.xlu0 %1595 }
0x10ea   :  { %3457 = vmatmul.mubr.msk.f32.vlgmr.msra.gmra.mxu1 %vm129_vm1, %v1596_v18 }
0x10eb   :  { %3471 = vmatpush3.msra.mxu1 %v4275_v20  ;;  %3478 = vmatprep.mubr.msk.f32.mxu1 %vm3720_vm0, %v3719_v4 }
0x10ec   :  { %3472 = vmatprep.subr.mxu1 %v3719_v4 }
0x10ed   :  { %3473 = vmatpush3.msra.mxu1 %v4284_v22 }
0x10ee   :  { %3474 = vmatprep.subr.mxu1 %v3719_v4 }
0x10ef   :  { %3475 = vmatpush3.msra.mxu1 %v4291_v32 }
0x10f0   :  { %3476 = vmatprep.subr.mxu1 %v3719_v4 }
0x10f1   :  { %3477 = vmatpush3.msra.mxu1 %v4298_v33  ;;  %v4311_v34 = vpop.permute.xlu1 %1932 }
0x10f2   :  { %3479 = vmatmul.mubr.msk.f32.vlgmr.msra.gmra.mxu1 %vm129_vm1, %v1596_v18  ;;  %3492 = vmatprep.subr.mxu1 %v3719_v4 }
0x10f3   :  { %3493 = vmatpush3.msra.mxu1 %v3946_v19  ;;  %3500 = vmatprep.mubr.msk.f32.mxu1 %vm3720_vm0, %v3719_v4 }
0x10f4   :  { %3494 = vmatprep.subr.mxu1 %v3719_v4 }
0x10f5   :  { %3495 = vmatpush3.msra.mxu1 %v3953_v12 }
0x10f6   :  { %3496 = vmatprep.subr.mxu1 %v3719_v4 }
0x10f7   :  { %3497 = vmatpush3.msra.mxu1 %v3962_v14 }
0x10f8   :  { %3498 = vmatprep.subr.mxu1 %v3719_v4 }
0x10f9   :  { %3499 = vmatpush3.msra.mxu1 %v3971_v21 }
0x10fa   :  { %3501 = vmatmul.mubr.msk.f32.vlgmr.msra.gmra.mxu1 %vm129_vm1, %v4311_v34  ;;  %3514 = vmatprep.subr.mxu1 %v3719_v4 }
0x10fb   :  { %3515 = vmatpush3.msra.mxu1 %v3900_v50  ;;  %3522 = vmatprep.mubr.msk.f32.mxu1 %vm3720_vm0, %v3719_v4  ;;  %v251_v50 = vadd.f32 %v3855_v25, %v4006_v30  ;;  %v4336_v25 = vld [vmem:[%s4611_s8] ss:$0 sm:$0xff] }
0x10fc   :  { %3516 = vmatprep.subr.mxu1 %v3719_v4 }
0x10fd   :  { %3517 = vmatpush3.msra.mxu1 %v3905_v51 }
0x10fe   :  { %3518 = vmatprep.subr.mxu1 %v3719_v4 }
0x10ff   :  { %3519 = vmatpush3.msra.mxu1 %v3912_v52 }
0x1100   :  { %3520 = vmatprep.subr.mxu1 %v3719_v4 }
0x1101   :  { %3521 = vmatpush3.msra.mxu1 %v3919_v53 }
0x1102   :  { %3536 = vmatprep.subr.mxu1 %v3719_v4 }
0x11aa   :  { %v1665_v35 = vpop.f32.mrf.mxu1 }
0x11ab   :  { %v1666_v51 = vadd.f32 %v4013_v38, %v1665_v35 }
0x11ac   :  { %v3458_v36 = vpop.f32.mrf.mxu1 }
0x11b2   :  { %v1831_v37 = vpop.f32.mrf.mxu1 }
0x11b3   :  { %v1835_v39 = vadd.f32 %v1831_v37, %v251_v50 }
0x11b4   :  { %v3480_v23 = vpop.f32.mrf.mxu1 }
0x11b5   :  { %3686 = vtanh.f32 %v1835_v39 }
0x11ba   :  { %v2002_v40 = vpop.f32.mrf.mxu1 }
0x11bb   :  { %v2006_v42 = vadd.f32 %v2002_v40, %v1666_v51 }
0x11bc   :  { %v3502_v52 = vpop.f32.mrf.mxu1 }
0x11bd   :  { %3688 = vtanh.f32 %v2006_v42 }
0x11c2   :  { %v3687_v8 = vpop.eup %3686 }
0x11c3   :  { %v1837_v53 = vmul.f32 %v3687_v8, %v3861_v29 }
0x11c5   :  { %v1838_v10 = vadd.f32 %v3866_v31, %v1837_v53 }
0x11c7   :  { %1841 = vrot.lane.b32.xlu0 %v1838_v10, %s3721_s16  ;;  %v1839_v46 = vmul.f32 %v1838_v10, %v4260_v2  ;;  %v3066_v2 = vld [vmem:[%s4612_s6 + $0x70] sm:$0xff] }
0x11ca   :  { %v3689_v11 = vpop.eup %3688 }
0x11cb   :  { %v2008_v30 = vmul.f32 %v4336_v25, %v3689_v11 }
0x11cd   :  { %v2009_v44 = vadd.f32 %v4342_v43, %v2008_v30 }
0x11cf   :  { %2012 = vrot.lane.b32.xlu1 %v2009_v44, %s3721_s16  ;;  %v2010_v49 = vmul.f32 %v2009_v44, %v4264_v5  ;;  %v3076_v5 = vld [vmem:[%s4612_s6 + $0xb0] sm:$0xff] }
0x1239   :  { %v1842_v29 = vpop.permute.xlu0 %1841 }
0x123a   :  { %v1844_v31 = vmul.f32 %v1842_v29, %v1838_v10 }
0x123c   :  { %1846 = vrot.lane.b32.xlu0 %v1844_v31, %s3722_s17 }
0x1241   :  { %v2013_v24 = vpop.permute.xlu1 %2012 }
0x1242   :  { %v2015_v45 = vmul.f32 %v2013_v24, %v2009_v44 }
0x1244   :  { %2017 = vrot.lane.b32.xlu1 %v2015_v45, %s3722_s17 }
0x12ae   :  { %v1847_v47 = vpop.permute.xlu0 %1846 }
0x12af   :  { %v4349_v48 = vadd.f32 %v1847_v47, %v1839_v46 }
0x12b1   :  { %3690 = vtanh.f32 %v4349_v48 }
0x12b6   :  { %v2018_v55 = vpop.permute.xlu1 %2017 }
0x12b7   :  { %v4353_v56 = vadd.f32 %v2018_v55, %v2010_v49 }
0x12b9   :  { %3692 = vtanh.f32 %v4353_v56 }
0x12be   :  { %v3691_v57 = vpop.eup %3690 }
0x12bf   :  { %1852 = vrot.lane.b32.xlu0 %v3691_v57, %s3721_s16 }
0x12c6   :  { %v3693_v26 = vpop.eup %3692 }
0x12c7   :  { %2023 = vrot.lane.b32.xlu1 %v3693_v26, %s3721_s16 }
0x1331   :  { %v1853_v58 = vpop.permute.xlu0 %1852 }
0x1332   :  { %v1855_v59 = vmul.f32 %v1853_v58, %v1838_v10  ;;  %v3713_v58 = vld [vmem:[%s4607_s4 + $0x38] sm:$0xff] }
0x1334   :  { %1857 = vrot.lane.b32.xlu0 %v1855_v59, %s3722_s17  ;;  %v3714_v59 = vld [vmem:[%s4607_s4 + $0x30] sm:$0xff] }
0x1339   :  { %v2024_v60 = vpop.permute.xlu1 %2023 }
0x133a   :  { %v2026_v61 = vmul.f32 %v2024_v60, %v2009_v44  ;;  %v3715_v60 = vld [vmem:[%s4607_s4 + $0x28] sm:$0xff] }
0x133c   :  { %2194 = vrot.lane.b32.xlu1 %v2026_v61, %s3722_s17  ;;  %v3062_v61 = vld [vmem:[%s4612_s6 + $0x58] sm:$0xff] }
0x13a6   :  { %v1858_v63 = vpop.permute.xlu0 %1857 }
0x13a7   :  { %3490 = vmatmul.mubr.msk.f32.vlgmr.msra.gmra.mxu0 %vm129_vm1, %v1858_v63 }
0x13a8   :  { %3504 = vmatpush3.msra.mxu0 %v4275_v20  ;;  %3511 = vmatprep.mubr.msk.f32.mxu0 %vm3720_vm0, %v3719_v4 }
0x13a9   :  { %3505 = vmatprep.subr.mxu0 %v3719_v4 }
0x13aa   :  { %3506 = vmatpush3.msra.mxu0 %v4284_v22 }
0x13ab   :  { %3507 = vmatprep.subr.mxu0 %v3719_v4 }
0x13ac   :  { %3508 = vmatpush3.msra.mxu0 %v4291_v32 }
0x13ad   :  { %3509 = vmatprep.subr.mxu0 %v3719_v4 }
0x13ae   :  { %3510 = vmatpush3.msra.mxu0 %v4298_v33  ;;  %v2195_v1 = vpop.permute.xlu1 %2194 }
0x13af   :  { %3512 = vmatmul.mubr.msk.f32.vlgmr.msra.gmra.mxu0 %vm129_vm1, %v1858_v63  ;;  %3525 = vmatprep.subr.mxu0 %v3719_v4  ;;  %v3716_v63 = vld [vmem:[%s4607_s4 + $0x20] sm:$0xff] }
0x13b0   :  { %3526 = vmatpush3.msra.mxu0 %v3946_v19  ;;  %3533 = vmatprep.mubr.msk.f32.mxu0 %vm3720_vm0, %v3719_v4  ;;  %v3056_v19 = vld [vmem:[%s4612_s6 + $0x30] sm:$0xff] }
0x13b1   :  { %3527 = vmatprep.subr.mxu0 %v3719_v4 }
0x13b2   :  { %3528 = vmatpush3.msra.mxu0 %v3953_v12  ;;  %v3055_v12 = vld [vmem:[%s4612_s6 + $0x28] sm:$0xff] }
0x13b3   :  { %3529 = vmatprep.subr.mxu0 %v3719_v4 }
0x13b4   :  { %3530 = vmatpush3.msra.mxu0 %v3962_v14  ;;  %v3054_v14 = vld [vmem:[%s4612_s6 + $0x20] sm:$0xff] }
0x13b5   :  { %3531 = vmatprep.subr.mxu0 %v3719_v4 }
0x13b6   :  { %3532 = vmatpush3.msra.mxu0 %v3971_v21  ;;  %v3067_v21 = vld [vmem:[%s4612_s6 + $0x78] sm:$0xff] }
0x13b7   :  { %3534 = vmatmul.mubr.msk.f32.vlgmr.msra.gmra.mxu0 %vm129_vm1, %v2195_v1  ;;  %3547 = vmatprep.subr.mxu0 %v3719_v4 }
0x13b8   :  { %3548 = vmatpush3.msra.mxu0 %v3057_v0  ;;  %3555 = vmatprep.mubr.msk.f32.mxu0 %vm3720_vm0, %v3719_v4 }
0x13b9   :  { %3549 = vmatprep.subr.mxu0 %v3719_v4 }
0x13ba   :  { %3550 = vmatpush3.msra.mxu0 %v3056_v19  ;;  %v3060_v19 = vld [vmem:[%s4612_s6 + $0x48] sm:$0xff] }
0x13bb   :  { %3551 = vmatprep.subr.mxu0 %v3719_v4 }
0x13bc   :  { %3552 = vmatpush3.msra.mxu0 %v3055_v12  ;;  %v3059_v12 = vld [vmem:[%s4612_s6 + $0x40] sm:$0xff] }
0x13bd   :  { %3553 = vmatprep.subr.mxu0 %v3719_v4 }
0x13be   :  { %3554 = vmatpush3.msra.mxu0 %v3054_v14  ;;  %v3072_v14 = vld [vmem:[%s4612_s6 + $0x98] sm:$0xff] }
0x13bf   :  { %3556 = vmatmul.mubr.msk.f32.vlgmr.msra.gmra.mxu0 %vm129_vm1, %v4114_v62  ;;  %3569 = vmatprep.subr.mxu0 %v3719_v4  ;;  %v3064_v62 = vld [vmem:[%s4612_s6 + $0x60] sm:$0xff] }
0x13c0   :  { %3570 = vmatpush3.msra.mxu0 %v3067_v21  ;;  %3577 = vmatprep.mubr.msk.f32.mxu0 %vm3720_vm0, %v3719_v4  ;;  %v3071_v21 = vld [vmem:[%s4612_s6 + $0x90] sm:$0xff] }
0x13c1   :  { %3571 = vmatprep.subr.mxu0 %v3719_v4 }
0x13c2   :  { %3572 = vmatpush3.msra.mxu0 %v3066_v2  ;;  %v3070_v2 = vld [vmem:[%s4612_s6 + $0x88] sm:$0xff] }
0x13c3   :  { %3573 = vmatprep.subr.mxu0 %v3719_v4 }
0x13c4   :  { %3574 = vmatpush3.msra.mxu0 %v3065_v41  ;;  %v3082_v41 = vld [vmem:[%s4612_s6 + $0xd8] sm:$0xff] }
0x13c5   :  { %3575 = vmatprep.subr.mxu0 %v3719_v4 }
0x13c6   :  { %3576 = vmatpush3.msra.mxu0 %v3064_v62  ;;  %v3081_v62 = vld [vmem:[%s4612_s6 + $0xd0] sm:$0xff] }
0x13c7   :  { %3578 = vmatmul.mubr.msk.f32.vlgmr.msra.gmra.mxu0 %vm129_vm1, %v4232_v6  ;;  %3591 = vmatprep.subr.mxu0 %v3719_v4  ;;  %v3074_v6 = vld [vmem:[%s4612_s6 + $0xa0] sm:$0xff] }
0x13c8   :  { %3592 = vmatpush3.msra.mxu0 %v3077_v3  ;;  %3599 = vmatprep.mubr.msk.f32.mxu0 %vm3720_vm0, %v3719_v4  ;;  %v3080_v3 = vld [vmem:[%s4612_s6 + $0xc8] sm:$0xff] }
0x13c9   :  { %3593 = vmatprep.subr.mxu0 %v3719_v4 }
0x13ca   :  { %3594 = vmatpush3.msra.mxu0 %v3076_v5  ;;  %v2388_v5 = vld [vmem:[%s4612_s6 + $0x18] sm:$0xff] }
0x13cb   :  { %3595 = vmatprep.subr.mxu0 %v3719_v4 }
0x13cc   :  { %3596 = vmatpush3.msra.mxu0 %v3075_v27  ;;  %v2387_v27 = vld [vmem:[%s4612_s6 + $0x10] sm:$0xff] }
0x13cd   :  { %3597 = vmatprep.subr.mxu0 %v3719_v4 }
0x13ce   :  { %3598 = vmatpush3.msra.mxu0 %v3074_v6  ;;  %v2386_v6 = vld [vmem:[%s4612_s6 + $0x8] sm:$0xff] }
0x13cf   :  { %3600 = vmatmul.mubr.msk.f32.vlgmr.msra.gmra.mxu0 %vm129_vm1, %v2195_v1  ;;  %3613 = vmatprep.subr.mxu0 %v3719_v4  ;;  %v3061_v1 = vld [vmem:[%s4612_s6 + $0x50] sm:$0xff] }
0x13d0   :  { %3621 = vmatprep.mubr.msk.f32.mxu0 %vm3720_vm0, %v3719_v4 }
0x1467   :  { %v1927_v9 = vpop.f32.mrf.mxu0 }
0x1468   :  { %v1928_v22 = vadd.f32 %v4013_v38, %v1927_v9  ;;  %v2385_v9 = vld [vmem:[%s4612_s6] sm:$0xff] }
0x1469   :  { %v3491_v13 = vpop.f32.mrf.mxu0 }
0x146f   :  { %v2093_v17 = vpop.f32.mrf.mxu0 }
0x1470   :  { %v2097_v18 = vadd.f32 %v2093_v17, %v256_v16  ;;  %v3717_v16 = vld [vmem:[%s4610_s5 + $0x1] ss:$0 sm:$0xff] }
0x1471   :  { %v3513_v20 = vpop.f32.mrf.mxu0 }
0x1472   :  { %3694 = vtanh.f32 %v2097_v18 }
0x1477   :  { %v2264_v32 = vpop.f32.mrf.mxu0 }
0x1478   :  { %v2268_v33 = vadd.f32 %v2264_v32, %v1928_v22 }
0x1479   :  { %v3535_v35 = vpop.f32.mrf.mxu0 }
0x147a   :  { %3696 = vtanh.f32 %v2268_v33 }
0x147f   :  { %v3695_v36 = vpop.eup %3694  ;;  %v4449_v50 = vpop.f32.mrf.mxu0 }
0x1480   :  { %v2099_v37 = vmul.f32 %v4336_v25, %v3695_v36 }
0x1481   :  { %v3557_v39 = vpop.f32.mrf.mxu0 }
0x1482   :  { %v2100_v23 = vadd.f32 %v4342_v43, %v2099_v37 }
0x1484   :  { %2103 = vrot.lane.b32.xlu0 %v2100_v23, %s3721_s16  ;;  %v2101_v44 = vmul.f32 %v2100_v23, %v4349_v48 }
0x1487   :  { %v3697_v28 = vpop.eup %3696  ;;  %v4454_v51 = vpop.f32.mrf.mxu0 }
0x1488   :  { %v2270_v40 = vmul.f32 %v4336_v25, %v3697_v28 }
0x1489   :  { %v3579_v38 = vpop.f32.mrf.mxu0 }
0x148a   :  { %v2271_v42 = vadd.f32 %v4342_v43, %v2270_v40 }
0x148c   :  { %2274 = vrot.lane.b32.xlu1 %v2271_v42, %s3721_s16  ;;  %v2272_v24 = vmul.f32 %v2271_v42, %v4353_v56 }
0x148f   :  { %v4459_v52 = vpop.f32.mrf.mxu0 }
0x1491   :  { %v3601_v8 = vpop.f32.mrf.mxu0 }
0x14f6   :  { %v2104_v53 = vpop.permute.xlu0 %2103 }
0x14f7   :  { %v2106_v10 = vmul.f32 %v2104_v53, %v2100_v23 }
0x14f9   :  { %2108 = vrot.lane.b32.xlu0 %v2106_v10, %s3722_s17 }
0x14fe   :  { %v2275_v11 = vpop.permute.xlu1 %2274 }
0x14ff   :  { %v2277_v30 = vmul.f32 %v2275_v11, %v2271_v42 }
0x1501   :  { %2279 = vrot.lane.b32.xlu1 %v2277_v30, %s3722_s17 }
0x156b   :  { %v2109_v29 = vpop.permute.xlu0 %2108 }
0x156c   :  { %v2111_v31 = vadd.f32 %v2109_v29, %v2101_v44 }
0x156e   :  { %3698 = vtanh.f32 %v2111_v31 }
0x1573   :  { %v2280_v45 = vpop.permute.xlu1 %2279 }
0x1574   :  { %v4465_v46 = vadd.f32 %v2280_v45, %v2272_v24  ;;  %v3084_v24 = vld [vmem:[%s4612_s6 + $0xe0] sm:$0xff] }
0x1576   :  { %3700 = vtanh.f32 %v4465_v46 }
0x157b   :  { %v3699_v47 = vpop.eup %3698 }
0x157c   :  { %2114 = vrot.lane.b32.xlu0 %v3699_v47, %s3721_s16 }
0x1583   :  { %v3701_v49 = vpop.eup %3700 }
0x1584   :  { %2285 = vrot.lane.b32.xlu1 %v3701_v49, %s3721_s16 }
0x15ee   :  { %v2115_v55 = vpop.permute.xlu0 %2114 }
0x15ef   :  { %v2117_v57 = vmul.f32 %v2115_v55, %v2100_v23 }
0x15f1   :  { %2119 = vrot.lane.b32.xlu0 %v2117_v57, %s3722_s17  ;;  %v3090_v57 = vld [vmem:[%s4613_s7] ss:$0 sm:$0xff] }
0x15f6   :  { %v2286_v48 = vpop.permute.xlu1 %2285 }
0x15f7   :  { %v2288_v26 = vmul.f32 %v2286_v48, %v2271_v42 }
0x15f9   :  { %2290 = vrot.lane.b32.xlu1 %v2288_v26, %s3722_s17 }
0x1663   :  { %v2120_v56 = vpop.permute.xlu0 %2119 }
0x1664   :  { %3523 = vmatmul.mubr.msk.f32.vlgmr.msra.gmra.mxu1 %vm129_vm1, %v2120_v56 }
0x1665   :  { %3537 = vmatpush3.msra.mxu1 %v3713_v58  ;;  %3544 = vmatprep.mubr.msk.f32.mxu1 %vm3720_vm0, %v3719_v4 }
0x1666   :  { %3538 = vmatprep.subr.mxu1 %v3719_v4 }
0x1667   :  { %3539 = vmatpush3.msra.mxu1 %v3714_v59 }
0x1668   :  { %3540 = vmatprep.subr.mxu1 %v3719_v4 }
0x1669   :  { %3541 = vmatpush3.msra.mxu1 %v3715_v60 }
0x166a   :  { %3542 = vmatprep.subr.mxu1 %v3719_v4 }
0x166b   :  { %3543 = vmatpush3.msra.mxu1 %v3716_v63  ;;  %v2291_v0 = vpop.permute.xlu1 %2290 }
0x166c   :  { %3558 = vmatprep.subr.mxu1 %v3719_v4  ;;  %3545 = vmatmul.mubr.msk.f32.vlgmr.msra.gmra.mxu1 %vm129_vm1, %v2291_v0 }
0x166d   :  { %3559 = vmatpush3.msra.mxu1 %v3062_v61  ;;  %3566 = vmatprep.mubr.msk.f32.mxu1 %vm3720_vm0, %v3719_v4 }
0x166e   :  { %3560 = vmatprep.subr.mxu1 %v3719_v4 }
0x166f   :  { %3561 = vmatpush3.msra.mxu1 %v3061_v1 }
0x1670   :  { %3562 = vmatprep.subr.mxu1 %v3719_v4 }
0x1671   :  { %3563 = vmatpush3.msra.mxu1 %v3060_v19 }
0x1672   :  { %3564 = vmatprep.subr.mxu1 %v3719_v4 }
0x1673   :  { %3565 = vmatpush3.msra.mxu1 %v3059_v12 }
0x1674   :  { %3567 = vmatmul.mubr.msk.f32.vlgmr.msra.gmra.mxu1 %vm129_vm1, %v4173_v54  ;;  %3580 = vmatprep.subr.mxu1 %v3719_v4  ;;  %v3069_v54 = vld [vmem:[%s4612_s6 + $0x80] sm:$0xff] }
0x1675   :  { %3581 = vmatpush3.msra.mxu1 %v3072_v14  ;;  %3588 = vmatprep.mubr.msk.f32.mxu1 %vm3720_vm0, %v3719_v4 }
0x1676   :  { %3582 = vmatprep.subr.mxu1 %v3719_v4 }
0x1677   :  { %3583 = vmatpush3.msra.mxu1 %v3071_v21 }
0x1678   :  { %3584 = vmatprep.subr.mxu1 %v3719_v4 }
0x1679   :  { %3585 = vmatpush3.msra.mxu1 %v3070_v2 }
0x167a   :  { %3586 = vmatprep.subr.mxu1 %v3719_v4 }
0x167b   :  { %3587 = vmatpush3.msra.mxu1 %v3069_v54 }
0x167c   :  { %3589 = vmatmul.mubr.msk.f32.vlgmr.msra.gmra.mxu1 %vm129_vm1, %v4311_v34  ;;  %3602 = vmatprep.subr.mxu1 %v3719_v4  ;;  %v3079_v34 = vld [vmem:[%s4612_s6 + $0xc0] sm:$0xff] }
0x167d   :  { %3603 = vmatpush3.msra.mxu1 %v3082_v41  ;;  %3610 = vmatprep.mubr.msk.f32.mxu1 %vm3720_vm0, %v3719_v4 }
0x167e   :  { %3604 = vmatprep.subr.mxu1 %v3719_v4 }
0x167f   :  { %3605 = vmatpush3.msra.mxu1 %v3081_v62 }
0x1680   :  { %3606 = vmatprep.subr.mxu1 %v3719_v4 }
0x1681   :  { %3607 = vmatpush3.msra.mxu1 %v3080_v3 }
0x1682   :  { %3608 = vmatprep.subr.mxu1 %v3719_v4 }
0x1683   :  { %3609 = vmatpush3.msra.mxu1 %v3079_v34 }
0x1684   :  { %3611 = vmatmul.mubr.msk.f32.vlgmr.msra.gmra.mxu1 %vm129_vm1, %v2291_v0  ;;  %3624 = vmatprep.subr.mxu1 %v3719_v4 }
0x1685   :  { %3625 = vmatpush3.msra.mxu1 %v2388_v5  ;;  %3632 = vmatprep.mubr.msk.f32.mxu1 %vm3720_vm0, %v3719_v4 }
0x1686   :  { %3626 = vmatprep.subr.mxu1 %v3719_v4 }
0x1687   :  { %3627 = vmatpush3.msra.mxu1 %v2387_v27 }
0x1688   :  { %3628 = vmatprep.subr.mxu1 %v3719_v4 }
0x1689   :  { %3629 = vmatpush3.msra.mxu1 %v2386_v6 }
0x168a   :  { %3630 = vmatprep.subr.mxu1 %v3719_v4 }
0x168b   :  { %3631 = vmatpush3.msra.mxu1 %v2385_v9 }
0x168c   :  { %3633 = vmatmul.mubr.msk.f32.vlgmr.msra.gmra.mxu1 %vm129_vm1, %v4055_v7 }
0x1724   :  { %v2189_v13 = vpop.f32.mrf.mxu1 }
0x1725   :  { %v2190_v17 = vadd.f32 %v3717_v16, %v2189_v13 }
0x1726   :  { %v3524_v15 = vpop.f32.mrf.mxu1 }
0x172c   :  { %v2360_v18 = vpop.f32.mrf.mxu1 }
0x172d   :  { %v2364_v20 = vadd.f32 %v2360_v18, %v2190_v17 }
0x172e   :  { %v3546_v22 = vpop.f32.mrf.mxu1 }
0x172f   :  { %3702 = vtanh.f32 %v2364_v20 }
0x1734   :  { %v2535_v32 = vpop.f32.mrf.mxu1 }
0x1736   :  { %v3568_v33 = vpop.f32.mrf.mxu1 }
0x173c   :  { %v3703_v35 = vpop.eup %3702  ;;  %v2685_v36 = vpop.f32.mrf.mxu1 }
0x173d   :  { %v2366_v37 = vmul.f32 %v4336_v25, %v3703_v35 }
0x173e   :  { %v3590_v39 = vpop.f32.mrf.mxu1 }
0x173f   :  { %v2367_v7 = vadd.f32 %v4342_v43, %v2366_v37 }
0x1741   :  { %2370 = vrot.lane.b32.xlu0 %v2367_v7, %s3721_s16  ;;  %v2368_v43 = vmul.f32 %v2367_v7, %v4465_v46 }
0x1744   :  { %v2835_v23 = vpop.f32.mrf.mxu1 }
0x1746   :  { %v3612_v28 = vpop.f32.mrf.mxu1 }
0x174c   :  { %v2985_v40 = vpop.f32.mrf.mxu1 }
0x174d   :  { %v2986_v38 = vadd.f32 %v2985_v40, %v4449_v50  ;;  %v3087_v50 = vld [vmem:[%s4612_s6 + $0xf8] sm:$0xff] }
0x174e   :  { %v3634_v42 = vpop.f32.mrf.mxu1  ;;  %3614 = vmatpush3.msra.mxu0 %v3087_v50 }
0x174f   :  { %v2989_v8 = vadd.f32 %v2986_v38, %v2535_v32  ;;  %3615 = vmatprep.subr.mxu0 %v3719_v4 }
0x1751   :  { %v2990_v53 = vadd.f32 %v2989_v8, %v4454_v51  ;;  %v3086_v51 = vld [vmem:[%s4612_s6 + $0xf0] sm:$0xff] }
0x1752   :  { %3616 = vmatpush3.msra.mxu0 %v3086_v51 }
0x1753   :  { %v2991_v10 = vadd.f32 %v2990_v53, %v2685_v36  ;;  %3617 = vmatprep.subr.mxu0 %v3719_v4 }
0x1755   :  { %v2992_v11 = vadd.f32 %v2991_v10, %v4459_v52  ;;  %v3085_v52 = vld [vmem:[%s4612_s6 + $0xe8] sm:$0xff] }
0x1756   :  { %3618 = vmatpush3.msra.mxu0 %v3085_v52 }
0x1757   :  { %v2993_v30 = vadd.f32 %v2992_v11, %v2835_v23  ;;  %3619 = vmatprep.subr.mxu0 %v3719_v4 }
0x1758   :  { %3620 = vmatpush3.msra.mxu0 %v3084_v24 }
0x17b3   :  { %v2371_v44 = vpop.permute.xlu0 %2370 }
0x17b4   :  { %v2373_v25 = vmul.f32 %v2371_v44, %v2367_v7 }
0x17b6   :  { %2375 = vrot.lane.b32.xlu1 %v2373_v25, %s3722_s17 }
0x1828   :  { %v2376_v29 = vpop.permute.xlu1 %2375 }
0x1829   :  { %v2378_v31 = vadd.f32 %v2376_v29, %v2368_v43 }
0x182b   :  { %3704 = vtanh.f32 %v2378_v31 }
0x1838   :  { %v3705_v45 = vpop.eup %3704 }
0x1839   :  { %2381 = vrot.lane.b32.xlu0 %v3705_v45, %s3721_s16 }
0x18ab   :  { %v2382_v46 = vpop.permute.xlu0 %2381 }
0x18ac   :  { %v2384_v47 = vmul.f32 %v2382_v46, %v2367_v7 }
0x18ae   :  { %2845 = vrot.lane.b32.xlu1 %v2384_v47, %s3722_s17 }
0x1920   :  { %v2846_v49 = vpop.permute.xlu1 %2845 }
0x1921   :  { %3622 = vmatmul.mubr.msk.f32.vlgmr.msra.gmra.mxu0 %vm129_vm1, %v2846_v49 }
0x19e1   :  { %v2915_v55 = vpop.f32.mrf.mxu0 }
0x19e2   :  { %v2994_v48 = vadd.f32 %v2993_v30, %v2915_v55 }
0x19e3   :  { %v3623_v26 = vpop.f32.mrf.mxu0 }
0x19e4   :  { %v3002_v4 = vadd.f32 %v3090_v57, %v2994_v48 }
0x19e6   :  { %3004 = vst.msk [vmem:[%s4614_s9] sm:$0xff] %vm3003_vm2, %v3002_v4 }

</bundles_post_ra>
